<compile_context>
chip_gen: v6e
topology: v6e:2x2x1
jax: 0.10.0
libtpu: 0.0.40
codegen_flags: <defaults>
</compile_context>

<pallas_src>
import jax
import jax.numpy as jnp
import numpy as np
from jax.experimental import pallas as pl
from jax.experimental.pallas import tpu as pltpu

THRESH = 1.0          # snn.Leaky default threshold
_LANE = 128           # TPU lane width
_COUT_PAD = 8         # fc1 output channels padded 5 -> 8 (sublane axis of output)


def _round_up(n, m):
    return (n + m - 1) // m * m


# -----------------------------------------------------------------------------
# Kernels (channel-major layout: samples on the lane axis).
# -----------------------------------------------------------------------------
def net_time_matmul_kernel(x_ref, spk1_ref, w02_ref, w1_ref, b1_ref, mem3_ref):
    f32 = jnp.float32
    on = x_ref[...] > THRESH                                           # (1, bm) lif0 spike

    # lif1 output has only two possible rows (spk0 off/on), precomputed in the
    # wrapper; row 63 is a constant-1 "bias feature" carrying the fc02 bias.
    spk1_t = jnp.where(on, spk1_ref[:, 1:2], spk1_ref[:, 0:1])        # (64, bm)

    # fc02 + max_pool1d(., 2): one fused (1024,64)x(64,bm) MXU dot with outputs
    # reordered [even | odd]; the pool is a VPU max of the two 512-row halves.
    h2_t = jnp.dot(w02_ref[...], spk1_t, preferred_element_type=f32)  # (1024, bm)
    cur2_t = jnp.maximum(h2_t[:512, :], h2_t[512:, :])                # (512, bm)
    spk2_t = (cur2_t > THRESH).astype(w1_ref.dtype)

    # fc1: channel-major (8,512)x(512,bm) dot -> compact lane-dense (8,bm) store.
    mem3_ref[...] = (jnp.dot(w1_ref[...], spk2_t, preferred_element_type=f32)
                     + b1_ref[...])


def net_time_lut_kernel(x_ref, lut_ref, mem3_ref):
    # lut_ref: (8, 2) -- column 0 = cur3 when the input neuron does not spike,
    # column 1 when it does. Condition computed once at (1, bm); where broadcasts.
    on = x_ref[...] > THRESH
    mem3_ref[...] = jnp.where(on, lut_ref[:, 1:2], lut_ref[:, 0:1])


# -----------------------------------------------------------------------------
# Parameter packing (pure glue, done once per call)
# -----------------------------------------------------------------------------
def _pack_matmul_params(params, use_bf16=False):
    W01, b01, W02, b02, W1, b1 = params  # PyTorch layout: W is (out, in)
    f32 = jnp.float32
    wdt = jnp.bfloat16 if use_bf16 else f32

    # Precompute the only two possible spk1 rows (spk0 in {0, 1}); append a
    # constant-1 entry (index 63) that carries the fc02 bias as weight row 63.
    spk0 = jnp.array([[0.0], [1.0]], f32)                       # off / on
    h1 = spk0 @ W01.astype(f32).T + b01.astype(f32)             # (2, 126)
    cur1 = jnp.max(h1.reshape(2, 63, 2), axis=-1)               # max_pool1d(., 2)
    spk1 = (cur1 > THRESH).astype(f32)                          # (2, 63)
    spk1 = jnp.concatenate([spk1, jnp.ones((2, 1), f32)], axis=1)   # (2, 64)
    spk1_pack = spk1.T.astype(wdt)                              # (64, 2): col0=off, col1=on

    # fc02: append bias as input column 63, reorder output rows [even | odd] so
    # max_pool1d is a max of the two 512-row halves. Kept in (out, in) = (1024, 64).
    w02_aug = jnp.concatenate([W02.astype(f32), b02.astype(f32)[:, None]], axis=1)
    w02_pack = jnp.concatenate([w02_aug[0::2, :], w02_aug[1::2, :]], axis=0).astype(wdt)

    # fc1: (5, 512) zero-padded to (8, 512); bias (8, 1). Channel-major output.
    w1_pack = jnp.pad(W1.astype(f32), ((0, _COUT_PAD - 5), (0, 0))).astype(wdt)
    b1_pack = jnp.pad(b1.astype(f32), (0, _COUT_PAD - 5)).reshape(_COUT_PAD, 1)
    return spk1_pack, w02_pack, w1_pack, b1_pack


def _lut_table(params):
    """cur3 values for spk0 in {0, 1}; O(1) work independent of batch size."""
    W01, b01, W02, b02, W1, b1 = params
    f32 = jnp.float32
    spk0 = jnp.array([[0.0], [1.0]], f32)
    h1 = spk0 @ W01.astype(f32).T + b01.astype(f32)
    cur1 = jnp.max(h1.reshape(2, 63, 2), axis=-1)
    spk1 = (cur1 > THRESH).astype(f32)
    h2 = spk1 @ W02.astype(f32).T + b02.astype(f32)
    cur2 = jnp.max(h2.reshape(2, 512, 2), axis=-1)
    spk2 = (cur2 > THRESH).astype(f32)
    cur3 = spk2 @ W1.astype(f32).T + b1.astype(f32)             # (2, 5)
    return jnp.pad(cur3.T, ((0, _COUT_PAD - 5), (0, 0)))        # (8, 2): col0=off, col1=on


# -----------------------------------------------------------------------------
# Wrappers
# -----------------------------------------------------------------------------
def _prep_x(x, block_m):
    """Flatten x to a lane-dense (1, M_pad) row, M padded to a multiple of the block."""
    B, T, _ = x.shape
    M = B * T
    bm = _round_up(max(_LANE, min(block_m, _round_up(M, _LANE))), _LANE)
    m_pad = _round_up(M, bm)
    x_flat = jnp.pad(x.reshape(M).astype(jnp.float32), (0, m_pad - M))
    return x_flat.reshape(1, m_pad), M, m_pad, bm


def _unpack_out(mem3_t, M, B, T):
    mem3 = mem3_t[:5, :M].T.reshape(B, T, 5)
    spk3 = (mem3 > THRESH).astype(jnp.float32)
    return spk3, mem3


def net_time_forward_matmul(x, params, *, block_m=512, use_bf16=False):
    """x: (B, T, 1) float32. Returns (spk3, mem3), each (B, T, 5)."""
    B, T, _ = x.shape
    x2, M, m_pad, bm = _prep_x(x, block_m)
    spk1_pack, w02_pack, w1_pack, b1_pack = _pack_matmul_params(params, use_bf16)

    weight_bytes = sum(int(a.size) * a.dtype.itemsize
                       for a in (spk1_pack, w02_pack, w1_pack, b1_pack))
    cost = pl.CostEstimate(
        flops=2 * m_pad * (64 * 1024 + 512 * _COUT_PAD),
        transcendentals=0,
        bytes_accessed=4 * m_pad + 4 * _COUT_PAD * m_pad + weight_bytes)

    mem3_t = pl.pallas_call(
        net_time_matmul_kernel,
        out_shape=jax.ShapeDtypeStruct((_COUT_PAD, m_pad), jnp.float32),
        grid_spec=pltpu.PrefetchScalarGridSpec(
            num_scalar_prefetch=0,
            grid=(m_pad // bm,),
            in_specs=[
                pl.BlockSpec((1, bm), lambda i: (0, i)),       # x, lane-dense
                pl.BlockSpec((64, 2), lambda i: (0, 0)),       # spk1 off/on rows (resident)
                pl.BlockSpec((1024, 64), lambda i: (0, 0)),    # fused fc02 weights (resident)
                pl.BlockSpec((_COUT_PAD, 512), lambda i: (0, 0)),
                pl.BlockSpec((_COUT_PAD, 1), lambda i: (0, 0)),
            ],
            out_specs=pl.BlockSpec((_COUT_PAD, bm), lambda i: (0, i)),
        ),
        compiler_params=pltpu.CompilerParams(
            dimension_semantics=("parallel",),
            vmem_limit_bytes=32 * 1024 * 1024),
        cost_estimate=cost,
    )(x2, spk1_pack, w02_pack, w1_pack, b1_pack)

    return _unpack_out(mem3_t, M, B, T)


def net_time_forward_lut(x, params, *, block_m=2048):
    """x: (B, T, 1) float32. Returns (spk3, mem3), each (B, T, 5)."""
    B, T, _ = x.shape
    x2, M, m_pad, bm = _prep_x(x, block_m)
    lut = _lut_table(params)

    mem3_t = pl.pallas_call(
        net_time_lut_kernel,
        out_shape=jax.ShapeDtypeStruct((_COUT_PAD, m_pad), jnp.float32),
        grid_spec=pltpu.PrefetchScalarGridSpec(
            num_scalar_prefetch=0,
            grid=(m_pad // bm,),
            in_specs=[
                pl.BlockSpec((1, bm), lambda i: (0, i)),
                pl.BlockSpec((_COUT_PAD, 2), lambda i: (0, 0)),
            ],
            out_specs=pl.BlockSpec((_COUT_PAD, bm), lambda i: (0, i)),
        ),
        compiler_params=pltpu.CompilerParams(dimension_semantics=("parallel",)),
    )(x2, lut)

    return _unpack_out(mem3_t, M, B, T)


# Recommended entry point (the two-entry-lookup collapse is the dominant win:
# the net depends on x only through a single binary feature).
net_time_forward = net_time_forward_lut


# -----------------------------------------------------------------------------
# Plain-JAX reference (original, unreordered PyTorch math) and deterministic init
# -----------------------------------------------------------------------------
def reference_forward(x, params):
    W01, b01, W02, b02, W1, b1 = params
    spk0 = (x > THRESH).astype(jnp.float32)
    h1 = spk0 @ W01.T + b01                                     # (B, T, 126)
    cur1 = jnp.max(h1.reshape(*h1.shape[:-1], 63, 2), axis=-1)  # max_pool1d(., 2)
    spk1 = (cur1 > THRESH).astype(jnp.float32)
    h2 = spk1 @ W02.T + b02                                     # (B, T, 1024)
    cur2 = jnp.max(h2.reshape(*h2.shape[:-1], 512, 2), axis=-1)
    spk2 = (cur2 > THRESH).astype(jnp.float32)
    cur3 = spk2 @ W1.T + b1                                     # (B, T, 5)
    spk3 = (cur3 > THRESH).astype(jnp.float32)
    return spk3, cur3


def init_params(key):
    """PyTorch nn.Linear-style init: U(-1/sqrt(fan_in), +1/sqrt(fan_in))."""
    ks = jax.random.split(key, 6)

    def lin(kw, kb, out_f, in_f):
        bound = 1.0 / np.sqrt(in_f)
        W = jax.random.uniform(kw, (out_f, in_f), jnp.float32, -bound, bound)
        b = jax.random.uniform(kb, (out_f,), jnp.float32, -bound, bound)
        return W, b

    W01, b01 = lin(ks[0], ks[1], 126, 1)      # fc01
    W02, b02 = lin(ks[2], ks[3], 1024, 63)    # fc02
    W1, b1 = lin(ks[4], ks[5], 5, 512)        # fc1
    return W01, b01, W02, b02, W1, b1


if __name__ == "__main__":
    key = jax.random.PRNGKey(0)
    kx, kp, kx2 = jax.random.split(key, 3)

    B, T = 2, 40                              # input_size = (1, 40) -> x: (B, 40, 1)
    x = 2.0 * jax.random.normal(kx, (B, T, 1), dtype=jnp.float32)
    params = init_params(kp)

    spk3_gold, mem3_gold = reference_forward(x, params)
    mem3_gold_np = np.asarray(mem3_gold)
    spk3_gold_np = np.asarray(spk3_gold)
    # spk3 is a strict '>' of mem3; only compare it where mem3 is not razor-close
    # to the threshold (avoids flakiness from tolerance-level differences).
    safe = np.abs(mem3_gold_np - THRESH) > 1e-4

    # General MXU matmul kernel (single block at this size).
    spk3_mm, mem3_mm = jax.block_until_ready(net_time_forward_matmul(x, params))
    np.testing.assert_allclose(np.asarray(mem3_mm), mem3_gold_np, rtol=1e-5, atol=1e-5)
    np.testing.assert_array_equal(np.asarray(spk3_mm)[safe], spk3_gold_np[safe])

    # Fast path: two-entry lookup select kernel.
    spk3_lut, mem3_lut = jax.block_until_ready(net_time_forward(x, params))
    np.testing.assert_allclose(np.asarray(mem3_lut), mem3_gold_np, rtol=1e-5, atol=1e-5)
    np.testing.assert_array_equal(np.asarray(spk3_lut)[safe], spk3_gold_np[safe])

    # Exercise the row grid (multiple blocks + ragged/padded tail) at a larger M.
    B2, T2 = 4, 200
    x_big = 2.0 * jax.random.normal(kx2, (B2, T2, 1), dtype=jnp.float32)
    _, mem3_gold_big = reference_forward(x_big, params)
    _, mem3_big = jax.block_until_ready(
        net_time_forward_matmul(x_big, params, block_m=128))
    np.testing.assert_allclose(np.asarray(mem3_big), np.asarray(mem3_gold_big),
                               rtol=1e-5, atol=1e-5)
    _, mem3_big_lut = jax.block_until_ready(
        net_time_forward_lut(x_big, params, block_m=256))
    np.testing.assert_allclose(np.asarray(mem3_big_lut), np.asarray(mem3_gold_big),
                               rtol=1e-5, atol=1e-5)

    # Optional bf16 weight path (v5e MXU speedup). Loose tolerance: bf16 weight
    # rounding can flip a handful of near-threshold hidden spikes (documented).
    _, mem3_bf16 = jax.block_until_ready(
        net_time_forward_matmul(x, params, use_bf16=True))
    np.testing.assert_allclose(np.asarray(mem3_bf16), mem3_gold_np, rtol=0, atol=0.25)

    # TODO(synk): if a learned/non-1.0 threshold is introduced, THRESH must be
    # threaded through both the kernels and the spk1/LUT precompute.

    print("KERNEL_OK")
</pallas_src>

<mosaic_0001>
module attributes {stable_mosaic.version = 11 : i64} {
  func.func @net_time_matmul_kernel(%arg0: i32, %arg1: memref<1x128xf32, #tpu.memory_space<vmem>>, %arg2: memref<64x2xf32, #tpu.memory_space<vmem>>, %arg3: memref<1024x64xf32, #tpu.memory_space<vmem>>, %arg4: memref<8x512xf32, #tpu.memory_space<vmem>>, %arg5: memref<8x1xf32, #tpu.memory_space<vmem>>, %arg6: memref<8x128xf32, #tpu.memory_space<vmem>>) attributes {dimension_semantics = [#tpu.dimension_semantics<parallel>], iteration_bounds = array<i64: 1>, scalar_prefetch = 0 : i64, scratch_operands = 0 : i64, tpu.core_type = #tpu.core_type<tc>, window_params = [{transform_indices = @transform_0, window_bounds = array<i64: 1, 128>}, {pipeline_mode = #tpu.pipeline_mode<synchronous>, transform_indices = @transform_1, window_bounds = array<i64: 64, 2>}, {pipeline_mode = #tpu.pipeline_mode<synchronous>, transform_indices = @transform_2, window_bounds = array<i64: 1024, 64>}, {pipeline_mode = #tpu.pipeline_mode<synchronous>, transform_indices = @transform_3, window_bounds = array<i64: 8, 512>}, {pipeline_mode = #tpu.pipeline_mode<synchronous>, transform_indices = @transform_4, window_bounds = array<i64: 8, 1>}, {transform_indices = @transform_5, window_bounds = array<i64: 8, 128>}]} {
    %c0 = arith.constant 0 : index
    %c0_0 = arith.constant 0 : index
    %0 = vector.load %arg1[%c0, %c0_0] : memref<1x128xf32, #tpu.memory_space<vmem>>, vector<1x128xf32>
    %cst = arith.constant 1.000000e+00 : f32
    %1 = vector.broadcast %cst : f32 to vector<1x128xf32>
    %2 = arith.cmpf ogt, %0, %1 : vector<1x128xf32>
    %c0_1 = arith.constant 0 : index
    %c1 = arith.constant 1 : index
    %3 = vector.load %arg2[%c0_1, %c1] : memref<64x2xf32, #tpu.memory_space<vmem>>, vector<64x1xf32>
    %c0_2 = arith.constant 0 : index
    %c0_3 = arith.constant 0 : index
    %4 = vector.load %arg2[%c0_2, %c0_3] : memref<64x2xf32, #tpu.memory_space<vmem>>, vector<64x1xf32>
    %5 = vector.shape_cast %2 : vector<1x128xi1> to vector<1x128xi1>
    %6 = vector.broadcast %5 : vector<1x128xi1> to vector<64x128xi1>
    %7 = vector.shape_cast %3 : vector<64x1xf32> to vector<64x1xf32>
    %8 = vector.broadcast %7 : vector<64x1xf32> to vector<64x128xf32>
    %9 = vector.shape_cast %4 : vector<64x1xf32> to vector<64x1xf32>
    %10 = vector.broadcast %9 : vector<64x1xf32> to vector<64x128xf32>
    %11 = arith.select %6, %8, %10 : vector<64x128xi1>, vector<64x128xf32>
    %c0_4 = arith.constant 0 : index
    %c0_5 = arith.constant 0 : index
    %12 = vector.load %arg3[%c0_4, %c0_5] : memref<1024x64xf32, #tpu.memory_space<vmem>>, vector<1024x64xf32>
    %cst_6 = arith.constant dense<0.000000e+00> : vector<1024x128xf32>
    %13 = tpu.matmul %12, %11, %cst_6 {dimension_numbers = #tpu.dot_dimension_numbers<[1], [0], [0], [1], [0, 0, 1, 1], [], []>} : vector<1024x64xf32>, vector<64x128xf32>, vector<1024x128xf32> -> vector<1024x128xf32>
    %14 = vector.extract_strided_slice %13 {offsets = [0, 0], sizes = [512, 128], strides = [1, 1]} : vector<1024x128xf32> to vector<512x128xf32>
    %15 = vector.extract_strided_slice %13 {offsets = [512, 0], sizes = [512, 128], strides = [1, 1]} : vector<1024x128xf32> to vector<512x128xf32>
    %16 = arith.maximumf %14, %15 : vector<512x128xf32>
    %cst_7 = arith.constant 1.000000e+00 : f32
    %17 = vector.broadcast %cst_7 : f32 to vector<512x128xf32>
    %18 = arith.cmpf ogt, %16, %17 : vector<512x128xf32>
    %19 = arith.extui %18 : vector<512x128xi1> to vector<512x128xi32>
    %20 = arith.sitofp %19 : vector<512x128xi32> to vector<512x128xf32>
    %c0_8 = arith.constant 0 : index
    %c0_9 = arith.constant 0 : index
    %21 = vector.load %arg4[%c0_8, %c0_9] : memref<8x512xf32, #tpu.memory_space<vmem>>, vector<8x512xf32>
    %cst_10 = arith.constant dense<0.000000e+00> : vector<8x128xf32>
    %22 = tpu.matmul %21, %20, %cst_10 {dimension_numbers = #tpu.dot_dimension_numbers<[1], [0], [0], [1], [0, 0, 1, 1], [], []>} : vector<8x512xf32>, vector<512x128xf32>, vector<8x128xf32> -> vector<8x128xf32>
    %c0_11 = arith.constant 0 : index
    %c0_12 = arith.constant 0 : index
    %23 = vector.load %arg5[%c0_11, %c0_12] : memref<8x1xf32, #tpu.memory_space<vmem>>, vector<8x1xf32>
    %24 = vector.broadcast %23 : vector<8x1xf32> to vector<8x128xf32>
    %25 = arith.addf %22, %24 : vector<8x128xf32>
    %c0_13 = arith.constant 0 : index
    %c0_14 = arith.constant 0 : index
    %26 = vector.load %arg6[%c0_13, %c0_14] : memref<8x128xf32, #tpu.memory_space<vmem>>, vector<8x128xf32>
    tpu.vector_store %arg6[%c0_13, %c0_14], %25 {strides = array<i32>} : memref<8x128xf32, #tpu.memory_space<vmem>>, vector<8x128xf32>,
    return
  }
  func.func @transform_0(%arg0: i32) -> (i32, i32) {
    %c0_i32 = arith.constant 0 : i32
    %c0_i32_0 = arith.constant 0 : i32
    return %c0_i32, %arg0 : i32, i32
  }
  func.func @transform_1(%arg0: i32) -> (i32, i32) {
    %c0_i32 = arith.constant 0 : i32
    %c0_i32_0 = arith.constant 0 : i32
    %c0_i32_1 = arith.constant 0 : i32
    return %c0_i32, %c0_i32_0 : i32, i32
  }
  func.func @transform_2(%arg0: i32) -> (i32, i32) {
    %c0_i32 = arith.constant 0 : i32
    %c0_i32_0 = arith.constant 0 : i32
    %c0_i32_1 = arith.constant 0 : i32
    return %c0_i32, %c0_i32_0 : i32, i32
  }
  func.func @transform_3(%arg0: i32) -> (i32, i32) {
    %c0_i32 = arith.constant 0 : i32
    %c0_i32_0 = arith.constant 0 : i32
    %c0_i32_1 = arith.constant 0 : i32
    return %c0_i32, %c0_i32_0 : i32, i32
  }
  func.func @transform_4(%arg0: i32) -> (i32, i32) {
    %c0_i32 = arith.constant 0 : i32
    %c0_i32_0 = arith.constant 0 : i32
    %c0_i32_1 = arith.constant 0 : i32
    return %c0_i32, %c0_i32_0 : i32, i32
  }
  func.func @transform_5(%arg0: i32) -> (i32, i32) {
    %c0_i32 = arith.constant 0 : i32
    %c0_i32_0 = arith.constant 0 : i32
    return %c0_i32, %arg0 : i32, i32
  }
}

</mosaic_0001>

<bundles_post_ra>
// kernel: tpu_custom_call.1
= control target key start
LH: loop header
LB: loop body
LE: loop exit
PB: predicated region body
PF: predicated region fallthrough
CT: control target
= control target key end

     0   :  { %v2474_v2 = vmov 1   ;;  %s3500_s0 = inlined_call_operand.vmem [shape: f32[1,128], index: 0, kind: input, shape index: {}]   ;;  %s3501_s1 = inlined_call_operand.vmem [shape: f32[64,2], index: 1, kind: input, shape index: {}]   ;;  %s3502_s2 = inlined_call_operand.vmem [shape: f32[1024,64], index: 2, kind: input, shape index: {}]   ;;  %s3503_s3 = inlined_call_operand.vmem [shape: f32[8,512], index: 3, kind: input, shape index: {}]   ;;  %s3504_s4 = inlined_call_operand.vmem [shape: f32[8,1], index: 4, kind: input, shape index: {}]   ;;  %s3505_s5 = inlined_call_operand.hbm [shape: f32[8,128], index: 5, kind: output, shape index: {}]  }
   0x1   :  { %v30_v0 = vld [vmem:[%s3501_s1 + $0x38] sm:$0xff]  ;;  %v29_v1 = vld [vmem:[%s3501_s1 + $0x30] sm:$0xff]  ;;  %2448 = vset.pattern.permute.xlu1 %v2474_v2  ;;  %2446 = vset.pattern.permute.xlu0 %v2474_v2 }
   0x2   :  { %74 = vperm.xlu0 %2446, %v30_v0   ;;  %69 = vperm.xlu1 %2448, %v29_v1  }
   0x3   :  { %10 = vsyncpa [#allocation3], 0  ;;  %v2475_v3 = vmov 0   ;;  %v28_v4 = vld [vmem:[%s3501_s1 + $0x28] sm:$0xff]  ;;  %v27_v5 = vld [vmem:[%s3501_s1 + $0x20] sm:$0xff]  ;;  %vm245_vm0 = vcmask 523264   ;;  %v32_v12 = vlaneseq }
   0x4   :  { %v26_v6 = vld [vmem:[%s3501_s1 + $0x18] sm:$0xff]  ;;  %v25_v7 = vld [vmem:[%s3501_s1 + $0x10] sm:$0xff]  ;;  %v24_v8 = vld [vmem:[%s3501_s1 + $0x8] sm:$0xff]  ;;  %s2477_s30 = smov [#allocation2]  }
   0x5   :  { %v23_v9 = vld [vmem:[%s3501_s1] sm:$0xff]  ;;  %v191_v11 = vld [vmem:[%s3502_s2 + $0x250] sm:$0xff]  ;;  %v33_v14 = vshrl.u32 %v32_v12, 7  ;;  %v118_v42 = vld [vmem:[%s3502_s2 + $0x8] sm:$0xff]  ;;  %s1748_s6 = sshll.u32 %s2477_s30, 4  ;;  %s1749_s6 = int_to_ptr.vmem [resolvable:$true] %s1748_s6 }
   0x6   :  { %2447 = vset.pattern.permute.xlu0 %v2475_v3  ;;  %2449 = vset.pattern.permute.xlu1 %v2475_v3  ;;  %v117_v10 = vld [vmem:[%s3502_s2] sm:$0xff]  ;;  %v192_v43 = vld [vmem:[%s3502_s2 + $0x258] sm:$0xff]  ;;  %v119_v44 = vld [vmem:[%s3502_s2 + $0x10] sm:$0xff]  ;;  %p2457_p1 = scmp.lt.s32.totalorder %s1749_s6, %s1749_s6 }
   0x7   :  { %106 = vperm.xlu0 %2447, %v30_v0   ;;  %102 = vperm.xlu1 %2449, %v29_v1   ;;  %v21_v13 = vld [vmem:[%s3500_s0] sm:$0x1]  ;;  %v34_v15 = vsub.s32 0, %v33_v14  ;;  %v120_v46 = vld [vmem:[%s3502_s2 + $0x18] sm:$0xff]  ;;  %v194_v47 = vld [vmem:[%s3502_s2 + $0x268] sm:$0xff] }
   0x8   :  { %2234 = vmatprep.mubr.msk.f32.mxu0 %vm245_vm0, %v117_v10  ;;  %2345 = vmatprep.mubr.msk.f32.mxu1 %vm245_vm0, %v191_v11  ;;  %vm22_vm1 = vcmp.gt.f32.partialorder %v21_v13, 1.0  ;;  %v193_v45 = vld [vmem:[%s3502_s2 + $0x260] sm:$0xff]  ;;  %v195_v49 = vld [vmem:[%s3502_s2 + $0x270] sm:$0xff]  ;;  %v122_v50 = vld [vmem:[%s3502_s2 + $0x28] sm:$0xff] }
   0x9   :  { %v31_v16 = vsel %vm22_vm1, 1, %v2475_v3  ;;  %v121_v48 = vld [vmem:[%s3502_s2 + $0x20] sm:$0xff]  ;;  %v196_v51 = vld [vmem:[%s3502_s2 + $0x278] sm:$0xff]  ;;  %v123_v52 = vld [vmem:[%s3502_s2 + $0x30] sm:$0xff] }
   0xa   :  { %v35_v17 = vrot.slane %v31_v16, %v34_v15  ;;  %v197_v53 = vld [vmem:[%s3502_s2 + $0x280] sm:$0xff]  ;;  %v124_v54 = vld [vmem:[%s3502_s2 + $0x38] sm:$0xff]  ;;  %v198_v55 = vld [vmem:[%s3502_s2 + $0x288] sm:$0xff] }
   0xb   :  { %2450 = vset.pattern.permute.xlu1 %v2474_v2  ;;  %98 = vperm.xlu0 %2447, %v28_v4   ;;  %v125_v56 = vld [vmem:[%s3502_s2 + $0x40] sm:$0xff]  ;;  %v199_v57 = vld [vmem:[%s3502_s2 + $0x290] sm:$0xff]  ;;  %v126_v58 = vld [vmem:[%s3502_s2 + $0x48] sm:$0xff] }
   0xc   :  { %64 = vperm.xlu1 %2450, %v28_v4   ;;  %vm36_vm2 = vcmp.eq.s32.totalorder %v35_v17, 1  ;;  %v200_v59 = vld [vmem:[%s3502_s2 + $0x298] sm:$0xff]  ;;  %v127_v60 = vld [vmem:[%s3502_s2 + $0x50] sm:$0xff]  ;;  %v201_v61 = vld [vmem:[%s3502_s2 + $0x2a0] sm:$0xff] }
   0xd   :  { %v128_v62 = vld [vmem:[%s3502_s2 + $0x58] sm:$0xff]  ;;  %v202_v63 = vld [vmem:[%s3502_s2 + $0x2a8] sm:$0xff]  ;;  %v129_v0 = vld [vmem:[%s3502_s2 + $0x60] sm:$0xff] }
   0xe   :  { %v203_v1 = vld [vmem:[%s3502_s2 + $0x2b0] sm:$0xff]  ;;  %v130_v2 = vld [vmem:[%s3502_s2 + $0x68] sm:$0xff]  ;;  %v208_v11 = vld [vmem:[%s3502_s2 + $0x2d8] sm:$0xff] }
   0xf   :  { %94 = vperm.xlu0 %2447, %v27_v5   ;;  %v131_v4 = vld [vmem:[%s3502_s2 + $0x70] sm:$0xff]  ;;  %v134_v10 = vld [vmem:[%s3502_s2 + $0x88] sm:$0xff]  ;;  %v209_v13 = vld [vmem:[%s3502_s2 + $0x2e0] sm:$0xff] }
  0x10   :  { %59 = vperm.xlu1 %2450, %v27_v5   ;;  %v205_v5 = vld [vmem:[%s3502_s2 + $0x2c0] sm:$0xff]  ;;  %v135_v12 = vld [vmem:[%s3502_s2 + $0x90] sm:$0xff]  ;;  %v136_v14 = vld [vmem:[%s3502_s2 + $0x98] sm:$0xff] }
  0x11   :  { %v210_v15 = vld [vmem:[%s3502_s2 + $0x2e8] sm:$0xff]  ;;  %v137_v16 = vld [vmem:[%s3502_s2 + $0xa0] sm:$0xff]  ;;  %v211_v17 = vld [vmem:[%s3502_s2 + $0x2f0] sm:$0xff] }
  0x13   :  { %90 = vperm.xlu0 %2447, %v26_v6  }
  0x14   :  { %54 = vperm.xlu1 %2450, %v26_v6   ;;  %v132_v6 = vld [vmem:[%s3502_s2 + $0x78] sm:$0xff] }
  0x17   :  { %86 = vperm.xlu0 %2447, %v25_v7  }
  0x18   :  { %49 = vperm.xlu1 %2450, %v25_v7   ;;  %v206_v7 = vld [vmem:[%s3502_s2 + $0x2c8] sm:$0xff] }
  0x1b   :  { %82 = vperm.xlu0 %2447, %v24_v8  }
  0x1c   :  { %44 = vperm.xlu1 %2450, %v24_v8   ;;  %v133_v8 = vld [vmem:[%s3502_s2 + $0x80] sm:$0xff] }
  0x1f   :  { %78 = vperm.xlu0 %2447, %v23_v9  }
  0x20   :  { %39 = vperm.xlu1 %2450, %v23_v9   ;;  %v207_v9 = vld [vmem:[%s3502_s2 + $0x2d0] sm:$0xff] }
  0x24   :  { %2451 = vset.pattern.permute.xlu1 %v2475_v3  ;;  %v204_v3 = vld [vmem:[%s3502_s2 + $0x2b8] sm:$0xff] }
  0x7d   :  { %v70_v18 = vpop.permute.xlu1 %69  ;;  %v75_v19 = vpop.permute.xlu0 %74 }
  0x82   :  { %v107_v20 = vpop.permute.xlu0 %106  ;;  %v103_v21 = vpop.permute.xlu1 %102 }
  0x83   :  { %v116_v22 = vsel %vm36_vm2, %v75_v19, %v107_v20  ;;  %v115_v23 = vsel %vm36_vm2, %v70_v18, %v103_v21  ;;  %v138_v18 = vld [vmem:[%s3502_s2 + $0xa8] sm:$0xff]  ;;  %v212_v19 = vld [vmem:[%s3502_s2 + $0x2f8] sm:$0xff]  ;;  %v139_v20 = vld [vmem:[%s3502_s2 + $0xb0] sm:$0xff] }
  0x84   :  { %2218 = vmatprep.subr.mxu0 %v116_v22  ;;  %2426 = vmatprep.subr.mxu1 %v116_v22  ;;  %v213_v21 = vld [vmem:[%s3502_s2 + $0x300] sm:$0xff] }
  0x85   :  { %2219 = vmatpush3.msra.mxu0 %v116_v22  ;;  %2434 = vmatpush3.msra.mxu1 %v116_v22  ;;  %v140_v22 = vld [vmem:[%s3502_s2 + $0xb8] sm:$0xff] }
  0x86   :  { %v99_v24 = vpop.permute.xlu0 %98  ;;  %2220 = vmatprep.subr.mxu0 %v115_v23  ;;  %2427 = vmatprep.subr.mxu1 %v115_v23 }
  0x87   :  { %v65_v25 = vpop.permute.xlu1 %64  ;;  %2221 = vmatpush3.msra.mxu0 %v115_v23  ;;  %2435 = vmatpush3.msra.mxu1 %v115_v23  ;;  %v214_v23 = vld [vmem:[%s3502_s2 + $0x308] sm:$0xff] }
  0x88   :  { %v114_v26 = vsel %vm36_vm2, %v65_v25, %v99_v24  ;;  %v141_v24 = vld [vmem:[%s3502_s2 + $0xc0] sm:$0xff]  ;;  %v215_v25 = vld [vmem:[%s3502_s2 + $0x310] sm:$0xff] }
  0x89   :  { %2222 = vmatprep.subr.mxu0 %v114_v26  ;;  %2428 = vmatprep.subr.mxu1 %v114_v26 }
  0x8a   :  { %v95_v27 = vpop.permute.xlu0 %94  ;;  %2223 = vmatpush3.msra.mxu0 %v114_v26  ;;  %2436 = vmatpush3.msra.mxu1 %v114_v26  ;;  %v142_v26 = vld [vmem:[%s3502_s2 + $0xc8] sm:$0xff] }
  0x8b   :  { %v60_v28 = vpop.permute.xlu1 %59 }
  0x8c   :  { %v113_v29 = vsel %vm36_vm2, %v60_v28, %v95_v27  ;;  %v216_v27 = vld [vmem:[%s3502_s2 + $0x318] sm:$0xff]  ;;  %v143_v28 = vld [vmem:[%s3502_s2 + $0xd0] sm:$0xff] }
  0x8d   :  { %2224 = vmatprep.subr.mxu0 %v113_v29  ;;  %2429 = vmatprep.subr.mxu1 %v113_v29 }
  0x8e   :  { %v91_v30 = vpop.permute.xlu0 %90  ;;  %2225 = vmatpush3.msra.mxu0 %v113_v29  ;;  %2437 = vmatpush3.msra.mxu1 %v113_v29  ;;  %v217_v29 = vld [vmem:[%s3502_s2 + $0x320] sm:$0xff] }
  0x8f   :  { %v55_v31 = vpop.permute.xlu1 %54 }
  0x90   :  { %v112_v32 = vsel %vm36_vm2, %v55_v31, %v91_v30  ;;  %v144_v30 = vld [vmem:[%s3502_s2 + $0xd8] sm:$0xff]  ;;  %v218_v31 = vld [vmem:[%s3502_s2 + $0x328] sm:$0xff] }
  0x91   :  { %2226 = vmatprep.subr.mxu0 %v112_v32  ;;  %2430 = vmatprep.subr.mxu1 %v112_v32 }
  0x92   :  { %v87_v33 = vpop.permute.xlu0 %86  ;;  %2227 = vmatpush3.msra.mxu0 %v112_v32  ;;  %2438 = vmatpush3.msra.mxu1 %v112_v32  ;;  %v145_v32 = vld [vmem:[%s3502_s2 + $0xe0] sm:$0xff] }
  0x93   :  { %v50_v34 = vpop.permute.xlu1 %49 }
  0x94   :  { %v111_v35 = vsel %vm36_vm2, %v50_v34, %v87_v33  ;;  %v219_v33 = vld [vmem:[%s3502_s2 + $0x330] sm:$0xff]  ;;  %v146_v34 = vld [vmem:[%s3502_s2 + $0xe8] sm:$0xff] }
  0x95   :  { %2228 = vmatprep.subr.mxu0 %v111_v35  ;;  %2431 = vmatprep.subr.mxu1 %v111_v35 }
  0x96   :  { %v83_v36 = vpop.permute.xlu0 %82  ;;  %2229 = vmatpush3.msra.mxu0 %v111_v35  ;;  %2439 = vmatpush3.msra.mxu1 %v111_v35  ;;  %v220_v35 = vld [vmem:[%s3502_s2 + $0x338] sm:$0xff] }
  0x97   :  { %v45_v37 = vpop.permute.xlu1 %44 }
  0x98   :  { %v110_v38 = vsel %vm36_vm2, %v45_v37, %v83_v36  ;;  %v147_v36 = vld [vmem:[%s3502_s2 + $0xf0] sm:$0xff]  ;;  %v221_v37 = vld [vmem:[%s3502_s2 + $0x340] sm:$0xff] }
  0x99   :  { %2230 = vmatprep.subr.mxu0 %v110_v38  ;;  %2432 = vmatprep.subr.mxu1 %v110_v38 }
  0x9a   :  { %v79_v39 = vpop.permute.xlu0 %78  ;;  %2231 = vmatpush3.msra.mxu0 %v110_v38  ;;  %2440 = vmatpush3.msra.mxu1 %v110_v38  ;;  %v148_v38 = vld [vmem:[%s3502_s2 + $0xf8] sm:$0xff] }
  0x9b   :  { %v40_v40 = vpop.permute.xlu1 %39 }
  0x9c   :  { %v109_v41 = vsel %vm36_vm2, %v40_v40, %v79_v39  ;;  %v222_v39 = vld [vmem:[%s3502_s2 + $0x348] sm:$0xff]  ;;  %v149_v40 = vld [vmem:[%s3502_s2 + $0x100] sm:$0xff] }
  0x9d   :  { %2232 = vmatprep.subr.mxu0 %v109_v41  ;;  %2433 = vmatprep.subr.mxu1 %v109_v41 }
  0x9e   :  { %2233 = vmatpush3.msra.mxu0 %v109_v41  ;;  %2441 = vmatpush3.msra.mxu1 %v109_v41  ;;  %v223_v41 = vld [vmem:[%s3502_s2 + $0x350] sm:$0xff] }
  0x9f   :  { %2235 = vmatmul.mubr.msk.f32.vlgmr.msra.gmra.mxu0 %vm245_vm0, %v118_v42  ;;  %2346 = vmatmul.mubr.msk.f32.vlgmr.msra.gmra.mxu1 %vm245_vm0, %v192_v43  ;;  %v150_v42 = vld [vmem:[%s3502_s2 + $0x108] sm:$0xff]  ;;  %v224_v43 = vld [vmem:[%s3502_s2 + $0x358] sm:$0xff] }
  0xa0   :  { %2237 = vmatprep.mubr.msk.f32.mxu0 %vm245_vm0, %v119_v44  ;;  %2348 = vmatprep.mubr.msk.f32.mxu1 %vm245_vm0, %v193_v45  ;;  %v151_v44 = vld [vmem:[%s3502_s2 + $0x110] sm:$0xff]  ;;  %v225_v45 = vld [vmem:[%s3502_s2 + $0x360] sm:$0xff] }
  0xa3   :  { %2238 = vmatmul.mubr.msk.f32.gmra.mxu0 %vm245_vm0, %v120_v46  ;;  %2349 = vmatmul.mubr.msk.f32.gmra.mxu1 %vm245_vm0, %v194_v47  ;;  %v152_v46 = vld [vmem:[%s3502_s2 + $0x118] sm:$0xff]  ;;  %v226_v47 = vld [vmem:[%s3502_s2 + $0x368] sm:$0xff] }
  0xa4   :  { %2240 = vmatprep.mubr.msk.f32.mxu0 %vm245_vm0, %v121_v48  ;;  %2351 = vmatprep.mubr.msk.f32.mxu1 %vm245_vm0, %v195_v49  ;;  %v153_v48 = vld [vmem:[%s3502_s2 + $0x120] sm:$0xff]  ;;  %v227_v49 = vld [vmem:[%s3502_s2 + $0x370] sm:$0xff] }
  0xa7   :  { %2241 = vmatmul.mubr.msk.f32.gmra.mxu0 %vm245_vm0, %v122_v50  ;;  %2352 = vmatmul.mubr.msk.f32.gmra.mxu1 %vm245_vm0, %v196_v51  ;;  %v154_v50 = vld [vmem:[%s3502_s2 + $0x128] sm:$0xff]  ;;  %v228_v51 = vld [vmem:[%s3502_s2 + $0x378] sm:$0xff] }
  0xa8   :  { %2243 = vmatprep.mubr.msk.f32.mxu0 %vm245_vm0, %v123_v52  ;;  %2354 = vmatprep.mubr.msk.f32.mxu1 %vm245_vm0, %v197_v53  ;;  %v155_v52 = vld [vmem:[%s3502_s2 + $0x130] sm:$0xff]  ;;  %v229_v53 = vld [vmem:[%s3502_s2 + $0x380] sm:$0xff] }
  0xab   :  { %2244 = vmatmul.mubr.msk.f32.gmra.mxu0 %vm245_vm0, %v124_v54  ;;  %2355 = vmatmul.mubr.msk.f32.gmra.mxu1 %vm245_vm0, %v198_v55  ;;  %v156_v54 = vld [vmem:[%s3502_s2 + $0x138] sm:$0xff]  ;;  %v230_v55 = vld [vmem:[%s3502_s2 + $0x388] sm:$0xff] }
  0xac   :  { %2246 = vmatprep.mubr.msk.f32.mxu0 %vm245_vm0, %v125_v56  ;;  %2357 = vmatprep.mubr.msk.f32.mxu1 %vm245_vm0, %v199_v57  ;;  %v157_v56 = vld [vmem:[%s3502_s2 + $0x140] sm:$0xff]  ;;  %v231_v57 = vld [vmem:[%s3502_s2 + $0x390] sm:$0xff] }
  0xaf   :  { %2247 = vmatmul.mubr.msk.f32.gmra.mxu0 %vm245_vm0, %v126_v58  ;;  %2358 = vmatmul.mubr.msk.f32.gmra.mxu1 %vm245_vm0, %v200_v59  ;;  %v158_v58 = vld [vmem:[%s3502_s2 + $0x148] sm:$0xff]  ;;  %v232_v59 = vld [vmem:[%s3502_s2 + $0x398] sm:$0xff] }
  0xb0   :  { %2249 = vmatprep.mubr.msk.f32.mxu0 %vm245_vm0, %v127_v60  ;;  %2360 = vmatprep.mubr.msk.f32.mxu1 %vm245_vm0, %v201_v61  ;;  %v159_v60 = vld [vmem:[%s3502_s2 + $0x150] sm:$0xff]  ;;  %v233_v61 = vld [vmem:[%s3502_s2 + $0x3a0] sm:$0xff] }
  0xb3   :  { %2250 = vmatmul.mubr.msk.f32.gmra.mxu0 %vm245_vm0, %v128_v62  ;;  %2361 = vmatmul.mubr.msk.f32.gmra.mxu1 %vm245_vm0, %v202_v63  ;;  %v160_v62 = vld [vmem:[%s3502_s2 + $0x158] sm:$0xff]  ;;  %v234_v63 = vld [vmem:[%s3502_s2 + $0x3a8] sm:$0xff] }
  0xb4   :  { %2252 = vmatprep.mubr.msk.f32.mxu0 %vm245_vm0, %v129_v0  ;;  %2363 = vmatprep.mubr.msk.f32.mxu1 %vm245_vm0, %v203_v1  ;;  %v161_v0 = vld [vmem:[%s3502_s2 + $0x160] sm:$0xff]  ;;  %v235_v1 = vld [vmem:[%s3502_s2 + $0x3b0] sm:$0xff] }
  0xb7   :  { %2253 = vmatmul.mubr.msk.f32.gmra.mxu0 %vm245_vm0, %v130_v2  ;;  %2364 = vmatmul.mubr.msk.f32.gmra.mxu1 %vm245_vm0, %v204_v3  ;;  %v162_v2 = vld [vmem:[%s3502_s2 + $0x168] sm:$0xff]  ;;  %v236_v3 = vld [vmem:[%s3502_s2 + $0x3b8] sm:$0xff] }
  0xb8   :  { %2255 = vmatprep.mubr.msk.f32.mxu0 %vm245_vm0, %v131_v4  ;;  %2366 = vmatprep.mubr.msk.f32.mxu1 %vm245_vm0, %v205_v5  ;;  %v163_v4 = vld [vmem:[%s3502_s2 + $0x170] sm:$0xff]  ;;  %v237_v5 = vld [vmem:[%s3502_s2 + $0x3c0] sm:$0xff] }
  0xbb   :  { %2256 = vmatmul.mubr.msk.f32.gmra.mxu0 %vm245_vm0, %v132_v6  ;;  %2367 = vmatmul.mubr.msk.f32.gmra.mxu1 %vm245_vm0, %v206_v7  ;;  %v164_v6 = vld [vmem:[%s3502_s2 + $0x178] sm:$0xff]  ;;  %v238_v7 = vld [vmem:[%s3502_s2 + $0x3c8] sm:$0xff] }
  0xbc   :  { %2258 = vmatprep.mubr.msk.f32.mxu0 %vm245_vm0, %v133_v8  ;;  %2369 = vmatprep.mubr.msk.f32.mxu1 %vm245_vm0, %v207_v9  ;;  %v165_v8 = vld [vmem:[%s3502_s2 + $0x180] sm:$0xff]  ;;  %v239_v9 = vld [vmem:[%s3502_s2 + $0x3d0] sm:$0xff] }
  0xbf   :  { %2259 = vmatmul.mubr.msk.f32.gmra.mxu0 %vm245_vm0, %v134_v10  ;;  %2370 = vmatmul.mubr.msk.f32.gmra.mxu1 %vm245_vm0, %v208_v11  ;;  %v166_v10 = vld [vmem:[%s3502_s2 + $0x188] sm:$0xff]  ;;  %v240_v11 = vld [vmem:[%s3502_s2 + $0x3d8] sm:$0xff] }
  0xc0   :  { %2261 = vmatprep.mubr.msk.f32.mxu0 %vm245_vm0, %v135_v12  ;;  %2372 = vmatprep.mubr.msk.f32.mxu1 %vm245_vm0, %v209_v13  ;;  %v167_v12 = vld [vmem:[%s3502_s2 + $0x190] sm:$0xff]  ;;  %v241_v13 = vld [vmem:[%s3502_s2 + $0x3e0] sm:$0xff] }
  0xc3   :  { %2262 = vmatmul.mubr.msk.f32.gmra.mxu0 %vm245_vm0, %v136_v14  ;;  %2373 = vmatmul.mubr.msk.f32.gmra.mxu1 %vm245_vm0, %v210_v15  ;;  %v168_v14 = vld [vmem:[%s3502_s2 + $0x198] sm:$0xff]  ;;  %v242_v15 = vld [vmem:[%s3502_s2 + $0x3e8] sm:$0xff] }
  0xc4   :  { %2264 = vmatprep.mubr.msk.f32.mxu0 %vm245_vm0, %v137_v16  ;;  %2375 = vmatprep.mubr.msk.f32.mxu1 %vm245_vm0, %v211_v17  ;;  %v169_v16 = vld [vmem:[%s3502_s2 + $0x1a0] sm:$0xff]  ;;  %v243_v17 = vld [vmem:[%s3502_s2 + $0x3f0] sm:$0xff] }
  0xc7   :  { %2265 = vmatmul.mubr.msk.f32.gmra.mxu0 %vm245_vm0, %v138_v18  ;;  %2376 = vmatmul.mubr.msk.f32.gmra.mxu1 %vm245_vm0, %v212_v19  ;;  %v170_v18 = vld [vmem:[%s3502_s2 + $0x1a8] sm:$0xff]  ;;  %v244_v19 = vld [vmem:[%s3502_s2 + $0x3f8] sm:$0xff] }
  0xc8   :  { %2267 = vmatprep.mubr.msk.f32.mxu0 %vm245_vm0, %v139_v20  ;;  %2378 = vmatprep.mubr.msk.f32.mxu1 %vm245_vm0, %v213_v21  ;;  %v171_v20 = vld [vmem:[%s3502_s2 + $0x1b0] sm:$0xff]  ;;  %v172_v21 = vld [vmem:[%s3502_s2 + $0x1b8] sm:$0xff] }
  0xcb   :  { %2268 = vmatmul.mubr.msk.f32.gmra.mxu0 %vm245_vm0, %v140_v22  ;;  %2379 = vmatmul.mubr.msk.f32.gmra.mxu1 %vm245_vm0, %v214_v23  ;;  %v173_v22 = vld [vmem:[%s3502_s2 + $0x1c0] sm:$0xff]  ;;  %v174_v23 = vld [vmem:[%s3502_s2 + $0x1c8] sm:$0xff] }
  0xcc   :  { %2270 = vmatprep.mubr.msk.f32.mxu0 %vm245_vm0, %v141_v24  ;;  %2381 = vmatprep.mubr.msk.f32.mxu1 %vm245_vm0, %v215_v25  ;;  %v175_v24 = vld [vmem:[%s3502_s2 + $0x1d0] sm:$0xff]  ;;  %v176_v25 = vld [vmem:[%s3502_s2 + $0x1d8] sm:$0xff] }
  0xcf   :  { %2271 = vmatmul.mubr.msk.f32.gmra.mxu0 %vm245_vm0, %v142_v26  ;;  %2382 = vmatmul.mubr.msk.f32.gmra.mxu1 %vm245_vm0, %v216_v27  ;;  %v177_v26 = vld [vmem:[%s3502_s2 + $0x1e0] sm:$0xff]  ;;  %v178_v27 = vld [vmem:[%s3502_s2 + $0x1e8] sm:$0xff] }
  0xd0   :  { %2273 = vmatprep.mubr.msk.f32.mxu0 %vm245_vm0, %v143_v28  ;;  %2384 = vmatprep.mubr.msk.f32.mxu1 %vm245_vm0, %v217_v29  ;;  %v179_v28 = vld [vmem:[%s3502_s2 + $0x1f0] sm:$0xff]  ;;  %v180_v29 = vld [vmem:[%s3502_s2 + $0x1f8] sm:$0xff] }
  0xd3   :  { %2274 = vmatmul.mubr.msk.f32.gmra.mxu0 %vm245_vm0, %v144_v30  ;;  %2385 = vmatmul.mubr.msk.f32.gmra.mxu1 %vm245_vm0, %v218_v31  ;;  %v181_v30 = vld [vmem:[%s3502_s2 + $0x200] sm:$0xff]  ;;  %v182_v31 = vld [vmem:[%s3502_s2 + $0x208] sm:$0xff] }
  0xd4   :  { %2276 = vmatprep.mubr.msk.f32.mxu0 %vm245_vm0, %v145_v32  ;;  %2387 = vmatprep.mubr.msk.f32.mxu1 %vm245_vm0, %v219_v33  ;;  %v183_v32 = vld [vmem:[%s3502_s2 + $0x210] sm:$0xff]  ;;  %v184_v33 = vld [vmem:[%s3502_s2 + $0x218] sm:$0xff] }
  0xd7   :  { %2277 = vmatmul.mubr.msk.f32.gmra.mxu0 %vm245_vm0, %v146_v34  ;;  %2388 = vmatmul.mubr.msk.f32.gmra.mxu1 %vm245_vm0, %v220_v35  ;;  %v185_v34 = vld [vmem:[%s3502_s2 + $0x220] sm:$0xff]  ;;  %v186_v35 = vld [vmem:[%s3502_s2 + $0x228] sm:$0xff] }
  0xd8   :  { %2279 = vmatprep.mubr.msk.f32.mxu0 %vm245_vm0, %v147_v36  ;;  %2390 = vmatprep.mubr.msk.f32.mxu1 %vm245_vm0, %v221_v37  ;;  %v187_v36 = vld [vmem:[%s3502_s2 + $0x230] sm:$0xff]  ;;  %v188_v37 = vld [vmem:[%s3502_s2 + $0x238] sm:$0xff] }
  0xdb   :  { %2280 = vmatmul.mubr.msk.f32.gmra.mxu0 %vm245_vm0, %v148_v38  ;;  %2391 = vmatmul.mubr.msk.f32.gmra.mxu1 %vm245_vm0, %v222_v39  ;;  %v189_v38 = vld [vmem:[%s3502_s2 + $0x240] sm:$0xff]  ;;  %v190_v39 = vld [vmem:[%s3502_s2 + $0x248] sm:$0xff] }
  0xdc   :  { %2282 = vmatprep.mubr.msk.f32.mxu0 %vm245_vm0, %v149_v40  ;;  %2393 = vmatprep.mubr.msk.f32.mxu1 %vm245_vm0, %v223_v41 }
  0xdf   :  { %2283 = vmatmul.mubr.msk.f32.gmra.mxu0 %vm245_vm0, %v150_v42  ;;  %2394 = vmatmul.mubr.msk.f32.gmra.mxu1 %vm245_vm0, %v224_v43 }
  0xe0   :  { %2285 = vmatprep.mubr.msk.f32.mxu0 %vm245_vm0, %v151_v44  ;;  %2396 = vmatprep.mubr.msk.f32.mxu1 %vm245_vm0, %v225_v45 }
  0xe3   :  { %2286 = vmatmul.mubr.msk.f32.gmra.mxu0 %vm245_vm0, %v152_v46  ;;  %2397 = vmatmul.mubr.msk.f32.gmra.mxu1 %vm245_vm0, %v226_v47 }
  0xe4   :  { %2288 = vmatprep.mubr.msk.f32.mxu0 %vm245_vm0, %v153_v48  ;;  %2399 = vmatprep.mubr.msk.f32.mxu1 %vm245_vm0, %v227_v49 }
  0xe7   :  { %2289 = vmatmul.mubr.msk.f32.gmra.mxu0 %vm245_vm0, %v154_v50  ;;  %2400 = vmatmul.mubr.msk.f32.gmra.mxu1 %vm245_vm0, %v228_v51 }
  0xe8   :  { %2291 = vmatprep.mubr.msk.f32.mxu0 %vm245_vm0, %v155_v52  ;;  %2402 = vmatprep.mubr.msk.f32.mxu1 %vm245_vm0, %v229_v53 }
  0xeb   :  { %2292 = vmatmul.mubr.msk.f32.gmra.mxu0 %vm245_vm0, %v156_v54  ;;  %2403 = vmatmul.mubr.msk.f32.gmra.mxu1 %vm245_vm0, %v230_v55 }
  0xec   :  { %2294 = vmatprep.mubr.msk.f32.mxu0 %vm245_vm0, %v157_v56  ;;  %2405 = vmatprep.mubr.msk.f32.mxu1 %vm245_vm0, %v231_v57 }
  0xef   :  { %2295 = vmatmul.mubr.msk.f32.gmra.mxu0 %vm245_vm0, %v158_v58  ;;  %2406 = vmatmul.mubr.msk.f32.gmra.mxu1 %vm245_vm0, %v232_v59 }
  0xf0   :  { %2297 = vmatprep.mubr.msk.f32.mxu0 %vm245_vm0, %v159_v60  ;;  %2408 = vmatprep.mubr.msk.f32.mxu1 %vm245_vm0, %v233_v61 }
  0xf3   :  { %2298 = vmatmul.mubr.msk.f32.gmra.mxu0 %vm245_vm0, %v160_v62  ;;  %2409 = vmatmul.mubr.msk.f32.gmra.mxu1 %vm245_vm0, %v234_v63 }
  0xf4   :  { %2300 = vmatprep.mubr.msk.f32.mxu0 %vm245_vm0, %v161_v0  ;;  %2411 = vmatprep.mubr.msk.f32.mxu1 %vm245_vm0, %v235_v1 }
  0xf7   :  { %2301 = vmatmul.mubr.msk.f32.gmra.mxu0 %vm245_vm0, %v162_v2  ;;  %2412 = vmatmul.mubr.msk.f32.gmra.mxu1 %vm245_vm0, %v236_v3 }
  0xf8   :  { %2303 = vmatprep.mubr.msk.f32.mxu0 %vm245_vm0, %v163_v4  ;;  %2414 = vmatprep.mubr.msk.f32.mxu1 %vm245_vm0, %v237_v5 }
  0xfb   :  { %2304 = vmatmul.mubr.msk.f32.gmra.mxu0 %vm245_vm0, %v164_v6  ;;  %2415 = vmatmul.mubr.msk.f32.gmra.mxu1 %vm245_vm0, %v238_v7 }
  0xfc   :  { %2306 = vmatprep.mubr.msk.f32.mxu0 %vm245_vm0, %v165_v8  ;;  %2417 = vmatprep.mubr.msk.f32.mxu1 %vm245_vm0, %v239_v9 }
  0xff   :  { %2307 = vmatmul.mubr.msk.f32.gmra.mxu0 %vm245_vm0, %v166_v10  ;;  %2418 = vmatmul.mubr.msk.f32.gmra.mxu1 %vm245_vm0, %v240_v11 }
 0x100   :  { %2309 = vmatprep.mubr.msk.f32.mxu0 %vm245_vm0, %v167_v12  ;;  %2420 = vmatprep.mubr.msk.f32.mxu1 %vm245_vm0, %v241_v13 }
 0x103   :  { %2310 = vmatmul.mubr.msk.f32.gmra.mxu0 %vm245_vm0, %v168_v14  ;;  %2421 = vmatmul.mubr.msk.f32.gmra.mxu1 %vm245_vm0, %v242_v15 }
 0x104   :  { %2312 = vmatprep.mubr.msk.f32.mxu0 %vm245_vm0, %v169_v16  ;;  %2423 = vmatprep.mubr.msk.f32.mxu1 %vm245_vm0, %v243_v17  ;;  %v1592_v17 = vld [vmem:[%s3503_s3 + $0x8] sm:$0xff] }
 0x107   :  { %2313 = vmatmul.mubr.msk.f32.gmra.mxu0 %vm245_vm0, %v170_v18  ;;  %2424 = vmatmul.mubr.msk.f32.gmra.mxu1 %vm245_vm0, %v244_v19 }
 0x108   :  { %2315 = vmatprep.mubr.msk.f32.mxu0 %vm245_vm0, %v171_v20  ;;  %1665 = vmatprep.mubr.f32.mxu1 %v1592_v17 }
 0x10b   :  { %2316 = vmatmul.mubr.msk.f32.gmra.mxu0 %vm245_vm0, %v172_v21 }
 0x10c   :  { %2318 = vmatprep.mubr.msk.f32.mxu0 %vm245_vm0, %v173_v22 }
 0x10f   :  { %2319 = vmatmul.mubr.msk.f32.gmra.mxu0 %vm245_vm0, %v174_v23 }
 0x110   :  { %2321 = vmatprep.mubr.msk.f32.mxu0 %vm245_vm0, %v175_v24 }
 0x113   :  { %2322 = vmatmul.mubr.msk.f32.gmra.mxu0 %vm245_vm0, %v176_v25 }
 0x114   :  { %2324 = vmatprep.mubr.msk.f32.mxu0 %vm245_vm0, %v177_v26 }
 0x117   :  { %2325 = vmatmul.mubr.msk.f32.gmra.mxu0 %vm245_vm0, %v178_v27 }
 0x118   :  { %2327 = vmatprep.mubr.msk.f32.mxu0 %vm245_vm0, %v179_v28 }
 0x11b   :  { %2328 = vmatmul.mubr.msk.f32.gmra.mxu0 %vm245_vm0, %v180_v29 }
 0x11c   :  { %2330 = vmatprep.mubr.msk.f32.mxu0 %vm245_vm0, %v181_v30 }
 0x11f   :  { %2331 = vmatmul.mubr.msk.f32.gmra.mxu0 %vm245_vm0, %v182_v31 }
 0x120   :  { %2333 = vmatprep.mubr.msk.f32.mxu0 %vm245_vm0, %v183_v32 }
 0x123   :  { %2334 = vmatmul.mubr.msk.f32.gmra.mxu0 %vm245_vm0, %v184_v33 }
 0x124   :  { %2336 = vmatprep.mubr.msk.f32.mxu0 %vm245_vm0, %v185_v34 }
 0x127   :  { %2337 = vmatmul.mubr.msk.f32.gmra.mxu0 %vm245_vm0, %v186_v35 }
 0x128   :  { %2339 = vmatprep.mubr.msk.f32.mxu0 %vm245_vm0, %v187_v36 }
 0x12b   :  { %2340 = vmatmul.mubr.msk.f32.gmra.mxu0 %vm245_vm0, %v188_v37 }
 0x12c   :  { %2342 = vmatprep.mubr.msk.f32.mxu0 %vm245_vm0, %v189_v38 }
 0x12f   :  { %2343 = vmatmul.mubr.msk.f32.gmra.mxu0 %vm245_vm0, %v190_v39 }
 0x15f   :  { %v3055_v40 = vpop.f32.mrf.mxu0  ;;  %v3057_v41 = vpop.f32.mrf.mxu1 }
 0x161   :  { %v3059_v42 = vpop.f32.mrf.mxu0  ;;  %v3061_v43 = vpop.f32.mrf.mxu1 }
 0x162   :  { %3528 = vst [vmem:[#allocation5_spill] sm:$0xff] %v3059_v42  ;;  %v3510_v42 = vmov 1.0  }
 0x163   :  { %v3063_v44 = vpop.f32.mrf.mxu0  ;;  %v3065_v45 = vpop.f32.mrf.mxu1 }
 0x165   :  { %v3067_v46 = vpop.f32.mrf.mxu0  ;;  %v3069_v47 = vpop.f32.mrf.mxu1 }
 0x167   :  { %v3071_v48 = vpop.f32.mrf.mxu0  ;;  %v3073_v49 = vpop.f32.mrf.mxu1 }
 0x169   :  { %v3075_v50 = vpop.f32.mrf.mxu0  ;;  %v3077_v51 = vpop.f32.mrf.mxu1 }
 0x16b   :  { %v3079_v52 = vpop.f32.mrf.mxu0  ;;  %v3081_v53 = vpop.f32.mrf.mxu1 }
 0x16c   :  { %3529 = vst [vmem:[#allocation6_spill] sm:$0xff] %v3081_v53 }
 0x16d   :  { %v3083_v54 = vpop.f32.mrf.mxu0  ;;  %v3085_v55 = vpop.f32.mrf.mxu1 }
 0x16e   :  { %3530 = vst [vmem:[#allocation7_spill] sm:$0xff] %v3085_v55 }
 0x16f   :  { %v3087_v56 = vpop.f32.mrf.mxu0  ;;  %v3089_v57 = vpop.f32.mrf.mxu1 }
 0x171   :  { %v3091_v58 = vpop.f32.mrf.mxu0  ;;  %v3093_v59 = vpop.f32.mrf.mxu1 }
 0x173   :  { %v3095_v60 = vpop.f32.mrf.mxu0  ;;  %v3097_v61 = vpop.f32.mrf.mxu1 }
 0x175   :  { %v3099_v62 = vpop.f32.mrf.mxu0  ;;  %v3101_v63 = vpop.f32.mrf.mxu1 }
 0x177   :  { %v3103_v0 = vpop.f32.mrf.mxu0  ;;  %v3105_v1 = vpop.f32.mrf.mxu1 }
 0x178   :  { %v1348_v53 = vmax.f32 %v3103_v0, %v3065_v45 }
 0x179   :  { %v3107_v2 = vpop.f32.mrf.mxu0  ;;  %v3109_v3 = vpop.f32.mrf.mxu1 }
 0x17a   :  { %vm1412_vm8 = vcmp.gt.f32.partialorder %v1348_v53, 1.0 }
 0x17b   :  { %v2257_v4 = vpop.f32.mrf.mxu0  ;;  %v3111_v5 = vpop.f32.mrf.mxu1 }
 0x17c   :  { %v1350_v16 = vmax.f32 %v2257_v4, %v3073_v49 }
 0x17d   :  { %v766_v6 = vpop.f32.mrf.mxu0  ;;  %v3113_v7 = vpop.f32.mrf.mxu1 }
 0x17e   :  { %v1349_v29 = vmax.f32 %v766_v6, %v3077_v51  ;;  %vm1414_vm4 = vcmp.gt.f32.partialorder %v1350_v16, 1.0 }
 0x17f   :  { %v3115_v8 = vpop.f32.mrf.mxu0  ;;  %v3117_v9 = vpop.f32.mrf.mxu1 }
 0x180   :  { %3531 = vst [vmem:[#allocation8_spill] sm:$0xff] %v3115_v8  ;;  %vm1413_vm6 = vcmp.gt.f32.partialorder %v1349_v29, 1.0 }
 0x181   :  { %v3121_v11 = vpop.f32.mrf.mxu0  ;;  %v3123_v12 = vpop.f32.mrf.mxu1 }
 0x182   :  { %3532 = vst [vmem:[#allocation9_spill] sm:$0xff] %v3121_v11 }
 0x183   :  { %v3127_v14 = vpop.f32.mrf.mxu0  ;;  %v2374_v15 = vpop.f32.mrf.mxu1 }
 0x185   :  { %v3134_v18 = vpop.f32.mrf.mxu0  ;;  %v1156_v19 = vpop.f32.mrf.mxu1 }
 0x187   :  { %v3138_v21 = vpop.f32.mrf.mxu0  ;;  %v2377_v22 = vpop.f32.mrf.mxu1 }
 0x189   :  { %v3142_v24 = vpop.f32.mrf.mxu0  ;;  %v1166_v25 = vpop.f32.mrf.mxu1 }
 0x18b   :  { %v3146_v27 = vpop.f32.mrf.mxu0  ;;  %v3148_v28 = vpop.f32.mrf.mxu1 }
 0x18c   :  { %3533 = vst [vmem:[#allocation10_spill] sm:$0xff] %v3148_v28 }
 0x18d   :  { %v3152_v30 = vpop.f32.mrf.mxu0  ;;  %v3154_v31 = vpop.f32.mrf.mxu1 }
 0x18e   :  { %3534 = vst [vmem:[#allocation11_spill] sm:$0xff] %v3154_v31 }
 0x18f   :  { %v3158_v33 = vpop.f32.mrf.mxu0  ;;  %v3160_v34 = vpop.f32.mrf.mxu1 }
 0x190   :  { %3535 = vst [vmem:[#allocation12_spill] sm:$0xff] %v3160_v34  ;;  %v1360_v53 = vmax.f32 %v3158_v33, %v3111_v5 }
 0x191   :  { %v3162_v35 = vpop.f32.mrf.mxu0  ;;  %v3164_v36 = vpop.f32.mrf.mxu1 }
 0x192   :  { %3536 = vst [vmem:[#allocation13_spill] sm:$0xff] %v3164_v36  ;;  %vm1424_vm15 = vcmp.gt.f32.partialorder %v1360_v53, 1.0 }
 0x193   :  { %v2275_v38 = vpop.f32.mrf.mxu0  ;;  %v3168_v39 = vpop.f32.mrf.mxu1 }
 0x194   :  { %3537 = vst [vmem:[#allocation14_spill] sm:$0xff] %v3168_v39  ;;  %v1362_v0 = vmax.f32 %v2275_v38, %v3117_v9 }
 0x195   :  { %v826_v17 = vpop.f32.mrf.mxu0  ;;  %v3170_v10 = vpop.f32.mrf.mxu1 }
 0x196   :  { %3538 = vst [vmem:[#allocation15_spill] sm:$0xff] %v3170_v10  ;;  %vm1426_vm11 = vcmp.gt.f32.partialorder %v1362_v0, 1.0 }
 0x197   :  { %v2278_v13 = vpop.f32.mrf.mxu0  ;;  %v3173_v32 = vpop.f32.mrf.mxu1 }
 0x198   :  { %3539 = vst [vmem:[#allocation16_spill] sm:$0xff] %v3173_v32  ;;  %v1364_v11 = vmax.f32 %v2278_v13, %v2374_v15  ;;  %v1346_v13 = vmax.f32 %v3095_v60, %v3057_v41 }
 0x199   :  { %v836_v20 = vpop.f32.mrf.mxu0  ;;  %v3184_v51 = vpop.f32.mrf.mxu1 }
 0x19a   :  { %v1363_v49 = vmax.f32 %v836_v20, %v1156_v19  ;;  %3541 = vst [vmem:[#allocation18_spill] sm:$0xff] %v3184_v51  ;;  %vm1428_vm7 = vcmp.gt.f32.partialorder %v1364_v11, 1.0  ;;  %v1345_v11 = vmax.f32 %v3099_v62, %v3061_v43  ;;  %vm1410_vm12 = vcmp.gt.f32.partialorder %v1346_v13, 1.0 }
 0x19b   :  { %v2281_v26 = vpop.f32.mrf.mxu0  ;;  %v3204_v9 = vpop.f32.mrf.mxu1 }
 0x19c   :  { %v1366_v23 = vmax.f32 %v2281_v26, %v2377_v22  ;;  %vm1427_vm9 = vcmp.gt.f32.partialorder %v1363_v49, 1.0  ;;  %vm1409_vm14 = vcmp.gt.f32.partialorder %v1345_v11, 1.0 }
 0x19d   :  { %v846_v55 = vpop.f32.mrf.mxu0  ;;  %v3225_v5 = vpop.f32.mrf.mxu1 }
 0x19e   :  { %vm1430_vm3 = vcmp.gt.f32.partialorder %v1366_v23, 1.0  ;;  %v1365_v37 = vmax.f32 %v846_v55, %v1166_v25  ;;  %v1347_v55 = vmax.f32 %v3107_v2, %v3069_v47  ;;  %v1361_v47 = vmax.f32 %v826_v17, %v3123_v12  ;;  %v1595_v12 = vld [vmem:[%s3504_s4] sm:$0xff]  ;;  %3546 = vst [vmem:[#allocation23_spill] sm:$0xff] %v3225_v5 }
 0x19f   :  { %v3178_v8 = vpop.f32.mrf.mxu0  ;;  %2148 = vmatprep.subr.msk.mxu1 %vm1430_vm3, %v3510_v42  ;;  %1598 = vperm.xlu1 %2451, %v1595_v12   ;;  %v3238_v23 = vpop.f32.mrf.mxu1  ;;  %v3570_v5 = vmov 1.0  }
 0x1a0   :  { %3540 = vst [vmem:[#allocation17_spill] sm:$0xff] %v3178_v8  ;;  %vm1429_vm5 = vcmp.gt.f32.partialorder %v1365_v37, 1.0  ;;  %2149 = vmatpush3.msk.msra.mxu1 %vm1414_vm4, %v3510_v42  ;;  %vm1411_vm10 = vcmp.gt.f32.partialorder %v1347_v55, 1.0  ;;  %vm1425_vm13 = vcmp.gt.f32.partialorder %v1361_v47, 1.0 }
 0x1a1   :  { %v3188_v45 = vpop.f32.mrf.mxu0  ;;  %2150 = vmatprep.subr.msk.mxu1 %vm1429_vm5, %v3510_v42  ;;  %v3246_v33 = vpop.f32.mrf.mxu1 }
 0x1a2   :  { %3542 = vst [vmem:[#allocation19_spill] sm:$0xff] %v3188_v45  ;;  %2151 = vmatpush3.msk.msra.mxu1 %vm1413_vm6, %v3510_v42 }
 0x1a3   :  { %v3197_v15 = vpop.f32.mrf.mxu0  ;;  %2152 = vmatprep.subr.msk.mxu1 %vm1428_vm7, %v3510_v42  ;;  %v3252_v17 = vpop.f32.mrf.mxu1 }
 0x1a4   :  { %3543 = vst [vmem:[#allocation20_spill] sm:$0xff] %v3197_v15  ;;  %2153 = vmatpush3.msk.msra.mxu1 %vm1412_vm8, %v3510_v42 }
 0x1a5   :  { %v3208_v41 = vpop.f32.mrf.mxu0  ;;  %2154 = vmatprep.subr.msk.mxu1 %vm1427_vm9, %v3510_v42  ;;  %v3258_v0 = vpop.f32.mrf.mxu1 }
 0x1a6   :  { %3544 = vst [vmem:[#allocation21_spill] sm:$0xff] %v3208_v41  ;;  %2155 = vmatpush3.msk.msra.mxu1 %vm1411_vm10, %v3510_v42 }
 0x1a7   :  { %v3219_v43 = vpop.f32.mrf.mxu0  ;;  %2156 = vmatprep.subr.msk.mxu1 %vm1426_vm11, %v3510_v42  ;;  %v3264_v11 = vpop.f32.mrf.mxu1 }
 0x1a8   :  { %3545 = vst [vmem:[#allocation22_spill] sm:$0xff] %v3219_v43  ;;  %2157 = vmatpush3.msk.msra.mxu1 %vm1410_vm12, %v3510_v42 }
 0x1a9   :  { %v3227_v16 = vpop.f32.mrf.mxu0  ;;  %2158 = vmatprep.subr.msk.mxu1 %vm1425_vm13, %v3510_v42  ;;  %v3270_v6 = vpop.f32.mrf.mxu1 }
 0x1aa   :  { %3547 = vst [vmem:[#allocation24_spill] sm:$0xff] %v3227_v16  ;;  %2159 = vmatpush3.msk.msra.mxu1 %vm1409_vm14, %v3510_v42 }
 0x1ab   :  { %v3233_v20 = vpop.f32.mrf.mxu0  ;;  %2160 = vmatprep.subr.msk.mxu1 %vm1424_vm15, %v3510_v42  ;;  %v3276_v2 = vpop.f32.mrf.mxu1 }
 0x1ac   :  { %3548 = vst [vmem:[#allocation25_spill] sm:$0xff] %v3233_v20  ;;  %3554 = vst [vmem:[#allocation31_spill] sm:$0xff] %v3276_v2 }
 0x1ad   :  { %v3240_v25 = vpop.f32.mrf.mxu0  ;;  %v3282_v26 = vpop.f32.mrf.mxu1 }
 0x1ae   :  { %3549 = vst [vmem:[#allocation26_spill] sm:$0xff] %v3240_v25  ;;  %3557 = vst [vmem:[#allocation34_spill] sm:$0xff] %v3282_v26 }
 0x1af   :  { %v3244_v29 = vpop.f32.mrf.mxu0  ;;  %v3288_v31 = vpop.f32.mrf.mxu1 }
 0x1b0   :  { %3560 = vst [vmem:[#allocation37_spill] sm:$0xff] %v3288_v31 }
 0x1b1   :  { %v3248_v37 = vpop.f32.mrf.mxu0  ;;  %v3294_v8 = vpop.f32.mrf.mxu1 }
 0x1b2   :  { %3550 = vst [vmem:[#allocation27_spill] sm:$0xff] %v3248_v37  ;;  %3562 = vst [vmem:[#allocation39_spill] sm:$0xff] %v3294_v8  ;;  %v3569_v37 = vmax.f32 %v3162_v35, %v3113_v7 }
 0x1b3   :  { %v3250_v38 = vpop.f32.mrf.mxu0 }
 0x1b4   :  { %vm1423_vm1 = vcmp.gt.f32.partialorder %v3569_v37, 1.0 }
 0x1b5   :  { %v3254_v49 = vpop.f32.mrf.mxu0 }
 0x1b7   :  { %v3256_v55 = vpop.f32.mrf.mxu0 }
 0x1b9   :  { %v3260_v13 = vpop.f32.mrf.mxu0 }
 0x1bb   :  { %v3262_v47 = vpop.f32.mrf.mxu0 }
 0x1bd   :  { %v3266_v53 = vpop.f32.mrf.mxu0 }
 0x1be   :  { %v1381_v35 = vmax.f32 %v3266_v53, %v3270_v6 }
 0x1bf   :  { %v3268_v12 = vpop.f32.mrf.mxu0 }
 0x1c0   :  { %3551 = vst [vmem:[#allocation28_spill] sm:$0xff] %v3268_v12 }
 0x1c1   :  { %v3272_v4 = vpop.f32.mrf.mxu0 }
 0x1c2   :  { %3552 = vst [vmem:[#allocation29_spill] sm:$0xff] %v3272_v4  ;;  %v3300_v4 = vpop.f32.mrf.mxu1 }
 0x1c3   :  { %v3274_v60 = vpop.f32.mrf.mxu0  ;;  %3564 = vst [vmem:[#allocation41_spill] sm:$0xff] %v3300_v4 }
 0x1c4   :  { %3553 = vst [vmem:[#allocation30_spill] sm:$0xff] %v3274_v60  ;;  %v3306_v15 = vpop.f32.mrf.mxu1 }
 0x1c5   :  { %v3278_v19 = vpop.f32.mrf.mxu0  ;;  %3565 = vst [vmem:[#allocation42_spill] sm:$0xff] %v3306_v15 }
 0x1c6   :  { %3555 = vst [vmem:[#allocation32_spill] sm:$0xff] %v3278_v19  ;;  %v3312_v10 = vpop.f32.mrf.mxu1 }
 0x1c7   :  { %v3280_v62 = vpop.f32.mrf.mxu0  ;;  %3566 = vst [vmem:[#allocation43_spill] sm:$0xff] %v3312_v10 }
 0x1c8   :  { %3556 = vst [vmem:[#allocation33_spill] sm:$0xff] %v3280_v62  ;;  %v3316_v8 = vpop.f32.mrf.mxu1 }
 0x1c9   :  { %v3284_v22 = vpop.f32.mrf.mxu0  ;;  %3567 = vst [vmem:[#allocation44_spill] sm:$0xff] %v3316_v8 }
 0x1ca   :  { %3558 = vst [vmem:[#allocation35_spill] sm:$0xff] %v3284_v22  ;;  %v3320_v60 = vpop.f32.mrf.mxu1 }
 0x1cb   :  { %v3286_v42 = vpop.f32.mrf.mxu0 }
 0x1cc   :  { %3559 = vst [vmem:[#allocation36_spill] sm:$0xff] %v3286_v42  ;;  %v3322_v25 = vpop.f32.mrf.mxu1 }
 0x1cd   :  { %v3290_v45 = vpop.f32.mrf.mxu0  ;;  %3568 = vst [vmem:[#allocation45_spill] sm:$0xff] %v3322_v25 }
 0x1ce   :  { %3561 = vst [vmem:[#allocation38_spill] sm:$0xff] %v3290_v45  ;;  %v3324_v32 = vpop.f32.mrf.mxu1 }
 0x1cf   :  { %v3292_v28 = vpop.f32.mrf.mxu0 }
 0x1d0   :  { %v3326_v4 = vpop.f32.mrf.mxu1 }
 0x1d1   :  { %v3296_v36 = vpop.f32.mrf.mxu0 }
 0x1d2   :  { %3563 = vst [vmem:[#allocation40_spill] sm:$0xff] %v3296_v36  ;;  %v3335_v36 = vpop.f32.mrf.mxu1 }
 0x1d3   :  { %v3298_v41 = vpop.f32.mrf.mxu0 }
 0x1d5   :  { %v3302_v34 = vpop.f32.mrf.mxu0 }
 0x1d7   :  { %v3304_v26 = vpop.f32.mrf.mxu0 }
 0x1d9   :  { %v3308_v12 = vpop.f32.mrf.mxu0 }
 0x1db   :  { %v3310_v2 = vpop.f32.mrf.mxu0 }
 0x1dd   :  { %v3314_v16 = vpop.f32.mrf.mxu0 }
 0x1df   :  { %v2332_v19 = vpop.f32.mrf.mxu0 }
 0x1e1   :  { %v3318_v39 = vpop.f32.mrf.mxu0 }
 0x1e3   :  { %v2335_v43 = vpop.f32.mrf.mxu0 }
 0x1e5   :  { %v1026_v31 = vpop.f32.mrf.mxu0 }
 0x1e7   :  { %v2338_v51 = vpop.f32.mrf.mxu0 }
 0x1e9   :  { %v1036_v22 = vpop.f32.mrf.mxu0 }
 0x1ea   :  { %v1339_v7 = vmax.f32 %v3075_v50, %v1036_v22 }
 0x1eb   :  { %v2341_v15 = vpop.f32.mrf.mxu0 }
 0x1ec   :  { %v1342_v42 = vmax.f32 %v3079_v52, %v2341_v15  ;;  %v1340_v52 = vmax.f32 %v3071_v48, %v2338_v51  ;;  %v3574_v48 = vmax.f32 %v3142_v24, %v3101_v63  ;;  %vm1403_vm10 = vcmp.gt.f32.partialorder %v1339_v7, 1.0  ;;  %v3582_v24 = vld [vmem:[#allocation7_spill] sm:$0xff] }
 0x1ed   :  { %v1046_v20 = vpop.f32.mrf.mxu0  ;;  %v3576_v63 = vmax.f32 %v3134_v18, %v3093_v59  ;;  %v1382_v59 = vmax.f32 %v3262_v47, %v3264_v11  ;;  %v3581_v18 = vld [vmem:[#allocation9_spill] sm:$0xff]  ;;  %v1396_v51 = vmax.f32 %v3304_v26, %v3335_v36  ;;  %v1379_v15 = vmax.f32 %v3260_v13, %v3258_v0  ;;  %v3598_v0 = vld [vmem:[#allocation35_spill] sm:$0xff]  ;;  %v3599_v47 = vld [vmem:[#allocation26_spill] sm:$0xff] }
 0x1ee   :  { %v1341_v25 = vmax.f32 %v3083_v54, %v1046_v20  ;;  %vm1406_vm4 = vcmp.gt.f32.partialorder %v1342_v42, 1.0  ;;  %v1316_v54 = vpop.f32.mrf.mxu1  ;;  %v1338_v42 = vmax.f32 %v3063_v44, %v2335_v43  ;;  %vm1404_vm8 = vcmp.gt.f32.partialorder %v1340_v52, 1.0  ;;  %v3587_v20 = vld [vmem:[#allocation27_spill] sm:$0xff]  ;;  %v3600_v11 = vld [vmem:[#allocation18_spill] sm:$0xff] }
 0x1ef   :  { %v2344_v62 = vpop.f32.mrf.mxu0  ;;  %vm1419_vm9 = vcmp.gt.f32.partialorder %v3574_v48, 1.0  ;;  %v1336_v44 = vmax.f32 %v3055_v40, %v2332_v19  ;;  %vm1417_vm13 = vcmp.gt.f32.partialorder %v3576_v63, 1.0  ;;  %v1395_v6 = vmax.f32 %v3308_v12, %v1316_v54  ;;  %v3586_v19 = vld [vmem:[#allocation23_spill] sm:$0xff]  ;;  %v3602_v12 = vld [vmem:[#allocation37_spill] sm:$0xff]  ;;  %v3605_v54 = vld [vmem:[#allocation14_spill] sm:$0xff] }
 0x1f0   :  { %v1344_v45 = vmax.f32 %v3087_v56, %v2344_v62  ;;  %v3571_v56 = vmax.f32 %v3146_v27, %v3105_v1  ;;  %vm1405_vm6 = vcmp.gt.f32.partialorder %v1341_v25, 1.0  ;;  %v3573_v1 = vmax.f32 %v3138_v21, %v3097_v61  ;;  %v2425_v50 = vpop.f32.mrf.mxu1  ;;  %v3591_v25 = vld [vmem:[#allocation38_spill] sm:$0xff]  ;;  %v3613_v63 = vld [vmem:[#allocation28_spill] sm:$0xff] }
 0x1f1   :  { %v1056_v8 = vpop.f32.mrf.mxu0  ;;  %v3575_v61 = vmax.f32 %v3127_v14, %v3089_v57  ;;  %vm1402_vm12 = vcmp.gt.f32.partialorder %v1338_v42, 1.0  ;;  %v3578_v57 = vld [vmem:[#allocation8_spill] sm:$0xff]  ;;  %v3579_v14 = vld [vmem:[#allocation6_spill] sm:$0xff]  ;;  %v1398_v40 = vmax.f32 %v3310_v2, %v2425_v50  ;;  %v3583_v27 = vmax.f32 %v3581_v18, %v3582_v24  ;;  %v3620_v18 = vld [vmem:[#allocation13_spill] sm:$0xff] }
 0x1f2   :  { %vm1408_vm0 = vcmp.gt.f32.partialorder %v1344_v45, 1.0  ;;  %v1343_v10 = vmax.f32 %v3091_v58, %v1056_v8  ;;  %vm1422_vm3 = vcmp.gt.f32.partialorder %v3571_v56, 1.0  ;;  %v3572_v58 = vmax.f32 %v3152_v30, %v3109_v3  ;;  %v3577_v8 = vld [vmem:[#allocation5_spill] sm:$0xff]  ;;  %v3603_v56 = vld [vmem:[#allocation30_spill] sm:$0xff]  ;;  %v3608_v42 = vld [vmem:[#allocation32_spill] sm:$0xff] }
 0x1f3   :  { %2161 = vmatpush3.msk.msra.mxu1 %vm1408_vm0, %v3570_v5  ;;  %vm1420_vm7 = vcmp.gt.f32.partialorder %v3573_v1, 1.0  ;;  %v1337_v3 = vmax.f32 %v3067_v46, %v1026_v31  ;;  %vm1418_vm11 = vcmp.gt.f32.partialorder %v3575_v61, 1.0  ;;  %v1326_v46 = vpop.f32.mrf.mxu1  ;;  %v3580_v21 = vmax.f32 %v3578_v57, %v3579_v14  ;;  %v1591_v31 = vld [vmem:[%s3503_s3] sm:$0xff]  ;;  %v3607_v1 = vld [vmem:[#allocation39_spill] sm:$0xff]  ;;  %v3617_v14 = vld [vmem:[#allocation34_spill] sm:$0xff] }
 0x1f4   :  { %vm1407_vm2 = vcmp.gt.f32.partialorder %v1343_v10, 1.0  ;;  %2162 = vmatprep.subr.msk.mxu1 %vm1423_vm1, %v3570_v5  ;;  %vm1421_vm5 = vcmp.gt.f32.partialorder %v3572_v58, 1.0  ;;  %v1335_v10 = vmax.f32 %v3577_v8, %v3318_v39  ;;  %vm1400_vm0 = vcmp.gt.f32.partialorder %v1336_v44, 1.0  ;;  %v1594_v39 = vld [vmem:[%s3503_s3 + $0x18] sm:$0xff]  ;;  %v3604_v58 = vld [vmem:[#allocation22_spill] sm:$0xff]  ;;  %v3609_v50 = vld [vmem:[#allocation24_spill] sm:$0xff] }
 0x1f5   :  { %2163 = vmatpush3.msk.msra.mxu1 %vm1407_vm2, %v3570_v5  ;;  %vm1401_vm14 = vcmp.gt.f32.partialorder %v1337_v3, 1.0  ;;  %vm1416_vm15 = vcmp.gt.f32.partialorder %v3580_v21, 1.0  ;;  %vm1415_vm1 = vcmp.gt.f32.partialorder %v3583_v27, 1.0  ;;  %v1397_v30 = vmax.f32 %v3314_v16, %v1326_v46  ;;  %v3610_v3 = vld [vmem:[#allocation15_spill] sm:$0xff]  ;;  %v3614_v8 = vld [vmem:[#allocation20_spill] sm:$0xff]  ;;  %v3618_v21 = vld [vmem:[#allocation29_spill] sm:$0xff] }
 0x1f6   :  { %2164 = vmatprep.subr.msk.mxu1 %vm1422_vm3, %v3570_v5  ;;  %vm1399_vm2 = vcmp.gt.f32.partialorder %v1335_v10, 1.0  ;;  %vm1462_vm3 = vcmp.gt.f32.partialorder %v1398_v40, 1.0  ;;  %v1380_v45 = vmax.f32 %v3256_v55, %v3252_v17  ;;  %v1394_v36 = vmax.f32 %v3298_v41, %v3324_v32  ;;  %v3595_v17 = vld [vmem:[#allocation16_spill] sm:$0xff]  ;;  %v3597_v55 = vld [vmem:[#allocation42_spill] sm:$0xff]  ;;  %v3612_v44 = vld [vmem:[#allocation31_spill] sm:$0xff] }
 0x1f7   :  { %2165 = vmatpush3.msk.msra.mxu1 %vm1406_vm4, %v3570_v5  ;;  %vm1446_vm4 = vcmp.gt.f32.partialorder %v1382_v59, 1.0  ;;  %v1378_v2 = vmax.f32 %v3250_v38, %v3238_v23  ;;  %v1393_v43 = vmax.f32 %v3302_v34, %v3326_v4  ;;  %v1377_v62 = vmax.f32 %v3254_v49, %v3246_v33  ;;  %v3584_v34 = vld [vmem:[#allocation45_spill] sm:$0xff]  ;;  %v3585_v4 = vld [vmem:[#allocation40_spill] sm:$0xff] }
 0x1f8   :  { %2166 = vmatprep.subr.msk.mxu1 %vm1421_vm5, %v3570_v5  ;;  %vm1461_vm5 = vcmp.gt.f32.partialorder %v1397_v30, 1.0  ;;  %v1392_v32 = vmax.f32 %v3292_v28, %v3320_v60  ;;  %v1376_v41 = vmax.f32 %v3244_v29, %v3204_v9  ;;  %v1391_v16 = vmax.f32 %v3585_v4, %v3584_v34  ;;  %v3588_v28 = vld [vmem:[#allocation43_spill] sm:$0xff]  ;;  %v3589_v60 = vld [vmem:[#allocation36_spill] sm:$0xff]  ;;  %v3592_v29 = vld [vmem:[#allocation41_spill] sm:$0xff] }
 0x1f9   :  { %2167 = vmatpush3.msk.msra.mxu1 %vm1405_vm6, %v3570_v5  ;;  %vm1445_vm6 = vcmp.gt.f32.partialorder %v1381_v35, 1.0  ;;  %v1375_v22 = vmax.f32 %v3587_v20, %v3586_v19  ;;  %v1390_v23 = vmax.f32 %v3589_v60, %v3588_v28  ;;  %v3590_v9 = vld [vmem:[#allocation44_spill] sm:$0xff]  ;;  %v3593_v33 = vld [vmem:[#allocation33_spill] sm:$0xff]  ;;  %v1387_v13 = vmax.f32 %v3598_v0, %v3597_v55  ;;  %v3623_v30 = vld [vmem:[#allocation10_spill] sm:$0xff] }
 0x1fa   :  { %2168 = vmatprep.subr.msk.mxu1 %vm1420_vm7, %v3570_v5  ;;  %vm1460_vm7 = vcmp.gt.f32.partialorder %v1396_v51, 1.0  ;;  %v1389_v26 = vmax.f32 %v3591_v25, %v3590_v9  ;;  %v1388_v37 = vmax.f32 %v3593_v33, %v3592_v29  ;;  %v3594_v38 = vld [vmem:[#allocation25_spill] sm:$0xff]  ;;  %v3601_v53 = vmax.f32 %v3599_v47, %v3600_v11  ;;  %v3615_v10 = vld [vmem:[#allocation12_spill] sm:$0xff]  ;;  %v1593_v35 = vld [vmem:[%s3503_s3 + $0x10] sm:$0xff]  ;;  %s2452_s3 = scalar_lea.vmem %s1749_s6, 128 }
 0x1fb   :  { %2169 = vmatpush3.msk.msra.mxu1 %vm1404_vm8, %v3570_v5  ;;  %vm1444_vm8 = vcmp.gt.f32.partialorder %v1380_v45, 1.0  ;;  %v3596_v49 = vmax.f32 %v3594_v38, %v3595_v17  ;;  %v1386_v52 = vmax.f32 %v3603_v56, %v3602_v12  ;;  %v3606_v7 = vmax.f32 %v3604_v58, %v3605_v54  ;;  %v3619_v59 = vld [vmem:[#allocation21_spill] sm:$0xff]  ;;  %v3626_v51 = vld [vmem:[#allocation11_spill] sm:$0xff]  ;;  %p2453_p0 = scmp.ne.s32.totalorder %s1749_s6, %s2452_s3  ;;  %p2458_p2 = scmp.lt.s32.totalorder %s2452_s3, %s2452_s3 }
 0x1fc   :  { %2170 = vmatprep.subr.msk.mxu1 %vm1419_vm9, %v3570_v5  ;;  %vm1459_vm9 = vcmp.gt.f32.partialorder %v1395_v6, 1.0  ;;  %v1385_v48 = vmax.f32 %v3608_v42, %v3607_v1  ;;  %v3611_v61 = vmax.f32 %v3609_v50, %v3610_v3  ;;  %v1384_v46 = vmax.f32 %v3613_v63, %v3612_v44  ;;  %v3622_v27 = vld [vmem:[#allocation17_spill] sm:$0xff] }
 0x1fd   :  { %2171 = vmatpush3.msk.msra.mxu1 %vm1403_vm10, %v3570_v5  ;;  %vm1443_vm10 = vcmp.gt.f32.partialorder %v1379_v15, 1.0  ;;  %v3616_v57 = vmax.f32 %v3614_v8, %v3615_v10  ;;  %v1383_v40 = vmax.f32 %v3618_v21, %v3617_v14  ;;  %v3621_v24 = vmax.f32 %v3619_v59, %v3620_v18  ;;  %p2459_p3 = por %p2458_p2, %p2457_p1 }
 0x1fe   :  { %2172 = vmatprep.subr.msk.mxu1 %vm1418_vm11, %v3570_v5  ;;  %vm1458_vm11 = vcmp.gt.f32.partialorder %v1394_v36, 1.0 }
 0x1ff   :  { %2173 = vmatpush3.msk.msra.mxu1 %vm1402_vm12, %v3570_v5  ;;  %vm1442_vm12 = vcmp.gt.f32.partialorder %v1378_v2, 1.0  ;;  %p2460_p4 = pnand %p2459_p3, %p2453_p0 }
 0x200   :  { %2174 = vmatprep.subr.msk.mxu1 %vm1417_vm13, %v3570_v5  ;;  %vm1457_vm13 = vcmp.gt.f32.partialorder %v1393_v43, 1.0 }
 0x201   :  { %2175 = vmatpush3.msk.msra.mxu1 %vm1401_vm14, %v3570_v5  ;;  %vm1441_vm14 = vcmp.gt.f32.partialorder %v1377_v62, 1.0 }
 0x202   :  { %2176 = vmatprep.subr.msk.mxu1 %vm1416_vm15, %v3570_v5  ;;  %vm1456_vm15 = vcmp.gt.f32.partialorder %v1392_v32, 1.0 }
 0x203   :  { %2177 = vmatpush3.msk.msra.mxu1 %vm1400_vm0, %v3570_v5  ;;  %vm1440_vm0 = vcmp.gt.f32.partialorder %v1376_v41, 1.0 }
 0x204   :  { %2178 = vmatprep.subr.msk.mxu1 %vm1415_vm1, %v3570_v5  ;;  %vm1455_vm1 = vcmp.gt.f32.partialorder %v1391_v16, 1.0 }
 0x205   :  { %2179 = vmatpush3.msk.msra.mxu1 %vm1399_vm2, %v3570_v5  ;;  %vm1439_vm2 = vcmp.gt.f32.partialorder %v1375_v22, 1.0 }
 0x206   :  { %2183 = vmatprep.subr.msk.mxu1 %vm1462_vm3, %v3570_v5  ;;  %1666 = vmatmul.mubr.f32.vlgmr.msra.gmra.mxu1 %v1591_v31  ;;  %vm1454_vm3 = vcmp.gt.f32.partialorder %v1390_v23, 1.0  ;;  %v3624_v31 = vmax.f32 %v3622_v27, %v3623_v30 }
 0x207   :  { %2184 = vmatpush3.msk.msra.mxu1 %vm1446_vm4, %v3570_v5  ;;  %1735 = vmatprep.mubr.f32.mxu1 %v1594_v39  ;;  %vm1438_vm4 = vcmp.gt.f32.partialorder %v3596_v49, 1.0  ;;  %v3625_v39 = vld [vmem:[#allocation19_spill] sm:$0xff] }
 0x208   :  { %2185 = vmatprep.subr.msk.mxu1 %vm1461_vm5, %v3570_v5  ;;  %vm1453_vm5 = vcmp.gt.f32.partialorder %v1389_v26, 1.0  ;;  %v3627_v45 = vmax.f32 %v3625_v39, %v3626_v51 }
 0x209   :  { %2186 = vmatpush3.msk.msra.mxu1 %vm1445_vm6, %v3570_v5  ;;  %vm1437_vm6 = vcmp.gt.f32.partialorder %v3601_v53, 1.0 }
 0x20a   :  { %2187 = vmatprep.subr.msk.mxu1 %vm1460_vm7, %v3570_v5  ;;  %vm1452_vm7 = vcmp.gt.f32.partialorder %v1388_v37, 1.0 }
 0x20b   :  { %2188 = vmatpush3.msk.msra.mxu1 %vm1444_vm8, %v3570_v5  ;;  %vm1436_vm8 = vcmp.gt.f32.partialorder %v3606_v7, 1.0 }
 0x20c   :  { %2189 = vmatprep.subr.msk.mxu1 %vm1459_vm9, %v3570_v5  ;;  %vm1451_vm9 = vcmp.gt.f32.partialorder %v1387_v13, 1.0 }
 0x20d   :  { %2190 = vmatpush3.msk.msra.mxu1 %vm1443_vm10, %v3570_v5  ;;  %vm1435_vm10 = vcmp.gt.f32.partialorder %v3611_v61, 1.0 }
 0x20e   :  { %2191 = vmatprep.subr.msk.mxu1 %vm1458_vm11, %v3570_v5  ;;  %vm1450_vm11 = vcmp.gt.f32.partialorder %v1386_v52, 1.0 }
 0x20f   :  { %2192 = vmatpush3.msk.msra.mxu1 %vm1442_vm12, %v3570_v5  ;;  %vm1434_vm12 = vcmp.gt.f32.partialorder %v3616_v57, 1.0 }
 0x210   :  { %2193 = vmatprep.subr.msk.mxu1 %vm1457_vm13, %v3570_v5  ;;  %vm1449_vm13 = vcmp.gt.f32.partialorder %v1385_v48, 1.0 }
 0x211   :  { %2194 = vmatpush3.msk.msra.mxu1 %vm1441_vm14, %v3570_v5  ;;  %vm1433_vm14 = vcmp.gt.f32.partialorder %v3621_v24, 1.0 }
 0x212   :  { %2195 = vmatprep.subr.msk.mxu1 %vm1456_vm15, %v3570_v5  ;;  %vm1448_vm15 = vcmp.gt.f32.partialorder %v1384_v46, 1.0 }
 0x213   :  { %2196 = vmatpush3.msk.msra.mxu1 %vm1440_vm0, %v3570_v5  ;;  %vm1432_vm0 = vcmp.gt.f32.partialorder %v3624_v31, 1.0 }
 0x214   :  { %2197 = vmatprep.subr.msk.mxu1 %vm1455_vm1, %v3570_v5  ;;  %vm1447_vm1 = vcmp.gt.f32.partialorder %v1383_v40, 1.0 }
 0x215   :  { %2198 = vmatpush3.msk.msra.mxu1 %vm1439_vm2, %v3570_v5  ;;  %vm1431_vm2 = vcmp.gt.f32.partialorder %v3627_v45, 1.0 }
 0x216   :  { %2199 = vmatprep.subr.msk.mxu1 %vm1454_vm3, %v3570_v5 }
 0x217   :  { %2200 = vmatpush3.msk.msra.mxu1 %vm1438_vm4, %v3570_v5 }
 0x218   :  { %2201 = vmatprep.subr.msk.mxu1 %vm1453_vm5, %v3570_v5 }
 0x219   :  { %2202 = vmatpush3.msk.msra.mxu1 %vm1437_vm6, %v3570_v5 }
 0x21a   :  { %2203 = vmatprep.subr.msk.mxu1 %vm1452_vm7, %v3570_v5  ;;  %v1599_v43 = vpop.permute.xlu1 %1598 }
 0x21b   :  { %2204 = vmatpush3.msk.msra.mxu1 %vm1436_vm8, %v3570_v5 }
 0x21c   :  { %2205 = vmatprep.subr.msk.mxu1 %vm1451_vm9, %v3570_v5 }
 0x21d   :  { %2206 = vmatpush3.msk.msra.mxu1 %vm1435_vm10, %v3570_v5 }
 0x21e   :  { %2207 = vmatprep.subr.msk.mxu1 %vm1450_vm11, %v3570_v5 }
 0x21f   :  { %2208 = vmatpush3.msk.msra.mxu1 %vm1434_vm12, %v3570_v5 }
 0x220   :  { %2209 = vmatprep.subr.msk.mxu1 %vm1449_vm13, %v3570_v5 }
 0x221   :  { %2210 = vmatpush3.msk.msra.mxu1 %vm1433_vm14, %v3570_v5 }
 0x222   :  { %2211 = vmatprep.subr.msk.mxu1 %vm1448_vm15, %v3570_v5 }
 0x223   :  { %2212 = vmatpush3.msk.msra.mxu1 %vm1432_vm0, %v3570_v5 }
 0x224   :  { %2213 = vmatprep.subr.msk.mxu1 %vm1447_vm1, %v3570_v5 }
 0x225   :  { %2214 = vmatpush3.msk.msra.mxu1 %vm1431_vm2, %v3570_v5 }
 0x226   :  { %1736 = vmatmul.mubr.f32.vlgmr.msra.gmra.mxu1 %v1593_v35 }
 0x2c6   :  { %v2180_v6 = vpop.f32.mrf.mxu1 }
 0x2c8   :  { %v2181_v15 = vpop.f32.mrf.mxu1 }
 0x2c9   :  { %v2182_v36 = vadd.f32 %v2181_v15, %v2180_v6 }
 0x2cb   :  { %v1668_v32 = vadd.f32 %v2182_v36, %v1599_v43 }
 0x2e6   :  { %v2215_v2 = vpop.f32.mrf.mxu1 }
 0x2e8   :  { %v2216_v62 = vpop.f32.mrf.mxu1 }
 0x2e9   :  { %v2217_v41 = vadd.f32 %v2216_v62, %v2215_v2 }
 0x2eb   :  { %v1738_v34 = vadd.f32 %v2217_v41, %v1668_v32 }
 0x2ed   :  { %1741 = vst [vmem:[#allocation2] sm:$0xff] %v1738_v34 }
 0x2ee   :  { %2463 = shalt.err (!%p2460_p4)
}
 0x2ef   :  { %1751 = dma.vmem_to_hbm [thread:$0]  %s1749_s6, 128, %s3505_s5, [#allocation3]  }
 0x2f0   :  { %2472 = dma.done.wait [#allocation3], 128  }
 0x2f1   :  { %2473 = vsyncadd [#allocation3], 4294967168 }
 0x2f2   :  { %1755 = vsyncpa [#allocation3], 1 }

</bundles_post_ra>
